<compile_context>
chip_gen: v7x
topology: tpu7x:2x2x1
jax: 0.10.0
libtpu: 0.0.40
codegen_flags: <defaults>
</compile_context>

<pallas_src>
import functools

import jax
import jax.numpy as jnp
from jax.experimental import pallas as pl
from jax.experimental.pallas import tpu as pltpu

EPS = 1e-5
LANE = 128
DIMS = [(784, 100), (100, 100), (100, 50), (50, 10)]       # FCModel layer shapes

# Packed-weight layout: layer 1 keeps its native 784 rows (the K of the first
# matmul); layers 2-4 have their input dims zero-padded to 128.  All output
# dims are zero-padded to 128 lanes.
PACK_ROWS = [DIMS[0][0]] + [LANE] * (len(DIMS) - 1)        # [784, 128, 128, 128]
PACK_OFFS = [sum(PACK_ROWS[:i]) for i in range(len(PACK_ROWS))]  # [0, 784, 912, 1040]
PACK_TOTAL = sum(PACK_ROWS)                                # 1168


def pack_weights(params):
    """One-time prep: pad, bf16-cast and concatenate w1..w4 into [1168,128]."""
    blocks = []
    for i, ((fin, fout), rows) in enumerate(zip(DIMS, PACK_ROWS), start=1):
        w = params[f"w{i}"].astype(jnp.bfloat16)            # [fin, fout]
        blocks.append(jnp.pad(w, ((0, rows - fin), (0, LANE - fout))))
    return jnp.concatenate(blocks, axis=0)                  # [1168, 128] bf16


def fc_model_kernel(x_ref, w_ref, o_ref):
    # x: [B, 784] f32 -> bf16 in VMEM (avoids a padded bf16 HBM copy).
    h = x_ref[...].astype(jnp.bfloat16)
    y = None
    for off, rows in zip(PACK_OFFS, PACK_ROWS):
        w = w_ref[pl.ds(off, rows), :]                      # aligned static view
        # Linear (bias dropped -- it cancels under fresh training-mode BN).
        y = jnp.dot(h, w, preferred_element_type=jnp.float32)
        # BatchNorm1d, training mode: batch mean + centered (biased) variance.
        mean = jnp.mean(y, axis=0, keepdims=True)
        c = y - mean
        var = jnp.mean(c * c, axis=0, keepdims=True)
        y = jnp.maximum(c * jax.lax.rsqrt(var + EPS), 0.0)  # BN + ReLU
        h = y.astype(jnp.bfloat16)
        # Zero-padded lanes stay exactly zero: (0-0)*rsqrt(0+eps)=0, relu(0)=0,
        # and they multiply zero weight rows in the next layer.
    o_ref[...] = y                                          # lane-dense [B,128] f32


@functools.partial(jax.jit, static_argnames=("vmem_limit_bytes",))
def fc_model_forward(x, w_packed, *, vmem_limit_bytes=48 * 1024 * 1024):
    """x: [B, 784] f32.  w_packed: output of pack_weights().  Returns [B,10] f32."""
    B, F = x.shape
    assert F == DIMS[0][0], F
    assert w_packed.shape == (PACK_TOTAL, LANE), w_packed.shape
    vmem = pl.BlockSpec(memory_space=pltpu.MemorySpace.VMEM)
    out_p = pl.pallas_call(
        fc_model_kernel,
        out_shape=jax.ShapeDtypeStruct((B, LANE), jnp.float32),
        in_specs=[vmem, vmem],
        out_specs=vmem,
        compiler_params=pltpu.CompilerParams(vmem_limit_bytes=vmem_limit_bytes),
    )(x, w_packed)
    return out_p[:, :DIMS[-1][1]]                           # slice padded 128 -> 10


def _reference_f32(x, params):
    """Pure-JAX f32 reference following the PyTorch module exactly
    (Linear with bias -> fresh training-mode BN -> ReLU)."""
    h = x
    for i in (1, 2, 3, 4):
        w, b = params[f"w{i}"], params[f"b{i}"]
        y = h @ w + b
        mean = jnp.mean(y, axis=0, keepdims=True)
        var = jnp.mean((y - mean) ** 2, axis=0, keepdims=True)
        h = jnp.maximum((y - mean) * jax.lax.rsqrt(var + EPS), 0.0)
    return h


def _reference_bf16(x, params):
    """Mirrors the kernel's numerics (bf16 operands, f32 accumulation,
    no bias, centered two-pass variance)."""
    h = x.astype(jnp.bfloat16)
    y = None
    for i in (1, 2, 3, 4):
        w = params[f"w{i}"].astype(jnp.bfloat16)
        y = jnp.dot(h, w, preferred_element_type=jnp.float32)
        mean = jnp.mean(y, axis=0, keepdims=True)
        c = y - mean
        var = jnp.mean(c * c, axis=0, keepdims=True)
        y = jnp.maximum(c * jax.lax.rsqrt(var + EPS), 0.0)
        h = y.astype(jnp.bfloat16)
    return y


def _init_params(key):
    """Deterministic init mimicking nn.Linear's uniform(-1/sqrt(in), 1/sqrt(in))."""
    params = {}
    for i, (fin, fout) in enumerate(DIMS, start=1):
        key, kw, kb = jax.random.split(key, 3)
        bound = 1.0 / (fin ** 0.5)
        params[f"w{i}"] = jax.random.uniform(
            kw, (fin, fout), jnp.float32, minval=-bound, maxval=bound)
        params[f"b{i}"] = jax.random.uniform(
            kb, (1, fout), jnp.float32, minval=-bound, maxval=bound)
    return params


if __name__ == "__main__":
    key = jax.random.PRNGKey(0)
    k_x, k_p = jax.random.split(key)

    # B is a multiple of 8 (full sublanes) and keeps the MXU M dim busy;
    # training-mode BatchNorm needs the whole batch in one call anyway.
    B = 128
    x = jax.random.normal(k_x, (B, 784), dtype=jnp.float32)
    params = _init_params(k_p)

    # One-time weight prep (hoisted out of the per-call path).
    w_packed = jax.block_until_ready(pack_weights(params))

    out = jax.block_until_ready(fc_model_forward(x, w_packed))
    assert out.shape == (B, 10), out.shape

    # Strict check vs. a reference that mirrors the kernel's bf16/f32 numerics.
    ref_bf16 = _reference_bf16(x, params)
    max_diff_bf16 = float(jnp.max(jnp.abs(out - ref_bf16)))
    assert max_diff_bf16 < 5e-3, max_diff_bf16

    # Sanity check vs. the full-f32 PyTorch-faithful reference (with biases);
    # differences are only bf16 rounding of the operands.
    ref_f32 = _reference_f32(x, params)
    max_diff_f32 = float(jnp.max(jnp.abs(out - ref_f32)))
    assert max_diff_f32 < 0.5, max_diff_f32

    print("KERNEL_OK")
</pallas_src>

<mosaic_0001>
module attributes {stable_mosaic.version = 11 : i64} {
  func.func @fc_model_kernel(%arg0: memref<128x784xf32, #tpu.memory_space<vmem>>, %arg1: memref<1168x128xbf16, #tpu.memory_space<vmem>>, %arg2: memref<128x128xf32, #tpu.memory_space<vmem>>) attributes {dimension_semantics = [], scalar_prefetch = 0 : i64, scratch_operands = 0 : i64, tpu.core_type = #tpu.core_type<tc>} {
    %c0 = arith.constant 0 : index
    %c0_0 = arith.constant 0 : index
    %0 = vector.load %arg0[%c0, %c0_0] : memref<128x784xf32, #tpu.memory_space<vmem>>, vector<128x784xf32>
    %1 = arith.truncf %0 : vector<128x784xf32> to vector<128x784xbf16>
    %c0_1 = arith.constant 0 : index
    %c0_2 = arith.constant 0 : index
    %2 = vector.load %arg1[%c0_1, %c0_2] : memref<1168x128xbf16, #tpu.memory_space<vmem>>, vector<784x128xbf16>
    %cst = arith.constant dense<0.000000e+00> : vector<128x128xf32>
    %3 = tpu.matmul %1, %2, %cst {dimension_numbers = #tpu.dot_dimension_numbers<[1], [0], [0], [1], [0, 0, 1, 1], [], []>} : vector<128x784xbf16>, vector<784x128xbf16>, vector<128x128xf32> -> vector<128x128xf32>
    %cst_3 = arith.constant dense<0.000000e+00> : vector<128xf32>
    %4 = vector.multi_reduction <add>, %3, %cst_3 [0] : vector<128x128xf32> to vector<128xf32>
    %5 = vector.shape_cast %4 : vector<128xf32> to vector<1x128xf32>
    %cst_4 = arith.constant 1.280000e+02 : f32
    %6 = vector.broadcast %cst_4 : f32 to vector<1x128xf32>
    %7 = arith.divf %5, %6 : vector<1x128xf32>
    %8 = vector.broadcast %7 : vector<1x128xf32> to vector<128x128xf32>
    %9 = arith.subf %3, %8 : vector<128x128xf32>
    %10 = arith.mulf %9, %9 : vector<128x128xf32>
    %cst_5 = arith.constant dense<0.000000e+00> : vector<128xf32>
    %11 = vector.multi_reduction <add>, %10, %cst_5 [0] : vector<128x128xf32> to vector<128xf32>
    %12 = vector.shape_cast %11 : vector<128xf32> to vector<1x128xf32>
    %cst_6 = arith.constant 1.280000e+02 : f32
    %13 = vector.broadcast %cst_6 : f32 to vector<1x128xf32>
    %14 = arith.divf %12, %13 : vector<1x128xf32>
    %cst_7 = arith.constant 9.99999974E-6 : f32
    %15 = vector.broadcast %cst_7 : f32 to vector<1x128xf32>
    %16 = arith.addf %14, %15 : vector<1x128xf32>
    %17 = math.rsqrt %16 : vector<1x128xf32>
    %18 = vector.broadcast %17 : vector<1x128xf32> to vector<128x128xf32>
    %19 = arith.mulf %9, %18 : vector<128x128xf32>
    %cst_8 = arith.constant 0.000000e+00 : f32
    %20 = vector.broadcast %cst_8 : f32 to vector<128x128xf32>
    %21 = arith.maximumf %19, %20 : vector<128x128xf32>
    %22 = arith.truncf %21 : vector<128x128xf32> to vector<128x128xbf16>
    %c784 = arith.constant 784 : index
    %c0_9 = arith.constant 0 : index
    %23 = vector.load %arg1[%c784, %c0_9] : memref<1168x128xbf16, #tpu.memory_space<vmem>>, vector<128x128xbf16>
    %cst_10 = arith.constant dense<0.000000e+00> : vector<128x128xf32>
    %24 = tpu.matmul %22, %23, %cst_10 {dimension_numbers = #tpu.dot_dimension_numbers<[1], [0], [0], [1], [0, 0, 1, 1], [], []>} : vector<128x128xbf16>, vector<128x128xbf16>, vector<128x128xf32> -> vector<128x128xf32>
    %cst_11 = arith.constant dense<0.000000e+00> : vector<128xf32>
    %25 = vector.multi_reduction <add>, %24, %cst_11 [0] : vector<128x128xf32> to vector<128xf32>
    %26 = vector.shape_cast %25 : vector<128xf32> to vector<1x128xf32>
    %cst_12 = arith.constant 1.280000e+02 : f32
    %27 = vector.broadcast %cst_12 : f32 to vector<1x128xf32>
    %28 = arith.divf %26, %27 : vector<1x128xf32>
    %29 = vector.broadcast %28 : vector<1x128xf32> to vector<128x128xf32>
    %30 = arith.subf %24, %29 : vector<128x128xf32>
    %31 = arith.mulf %30, %30 : vector<128x128xf32>
    %cst_13 = arith.constant dense<0.000000e+00> : vector<128xf32>
    %32 = vector.multi_reduction <add>, %31, %cst_13 [0] : vector<128x128xf32> to vector<128xf32>
    %33 = vector.shape_cast %32 : vector<128xf32> to vector<1x128xf32>
    %cst_14 = arith.constant 1.280000e+02 : f32
    %34 = vector.broadcast %cst_14 : f32 to vector<1x128xf32>
    %35 = arith.divf %33, %34 : vector<1x128xf32>
    %cst_15 = arith.constant 9.99999974E-6 : f32
    %36 = vector.broadcast %cst_15 : f32 to vector<1x128xf32>
    %37 = arith.addf %35, %36 : vector<1x128xf32>
    %38 = math.rsqrt %37 : vector<1x128xf32>
    %39 = vector.broadcast %38 : vector<1x128xf32> to vector<128x128xf32>
    %40 = arith.mulf %30, %39 : vector<128x128xf32>
    %cst_16 = arith.constant 0.000000e+00 : f32
    %41 = vector.broadcast %cst_16 : f32 to vector<128x128xf32>
    %42 = arith.maximumf %40, %41 : vector<128x128xf32>
    %43 = arith.truncf %42 : vector<128x128xf32> to vector<128x128xbf16>
    %c912 = arith.constant 912 : index
    %c0_17 = arith.constant 0 : index
    %44 = vector.load %arg1[%c912, %c0_17] : memref<1168x128xbf16, #tpu.memory_space<vmem>>, vector<128x128xbf16>
    %cst_18 = arith.constant dense<0.000000e+00> : vector<128x128xf32>
    %45 = tpu.matmul %43, %44, %cst_18 {dimension_numbers = #tpu.dot_dimension_numbers<[1], [0], [0], [1], [0, 0, 1, 1], [], []>} : vector<128x128xbf16>, vector<128x128xbf16>, vector<128x128xf32> -> vector<128x128xf32>
    %cst_19 = arith.constant dense<0.000000e+00> : vector<128xf32>
    %46 = vector.multi_reduction <add>, %45, %cst_19 [0] : vector<128x128xf32> to vector<128xf32>
    %47 = vector.shape_cast %46 : vector<128xf32> to vector<1x128xf32>
    %cst_20 = arith.constant 1.280000e+02 : f32
    %48 = vector.broadcast %cst_20 : f32 to vector<1x128xf32>
    %49 = arith.divf %47, %48 : vector<1x128xf32>
    %50 = vector.broadcast %49 : vector<1x128xf32> to vector<128x128xf32>
    %51 = arith.subf %45, %50 : vector<128x128xf32>
    %52 = arith.mulf %51, %51 : vector<128x128xf32>
    %cst_21 = arith.constant dense<0.000000e+00> : vector<128xf32>
    %53 = vector.multi_reduction <add>, %52, %cst_21 [0] : vector<128x128xf32> to vector<128xf32>
    %54 = vector.shape_cast %53 : vector<128xf32> to vector<1x128xf32>
    %cst_22 = arith.constant 1.280000e+02 : f32
    %55 = vector.broadcast %cst_22 : f32 to vector<1x128xf32>
    %56 = arith.divf %54, %55 : vector<1x128xf32>
    %cst_23 = arith.constant 9.99999974E-6 : f32
    %57 = vector.broadcast %cst_23 : f32 to vector<1x128xf32>
    %58 = arith.addf %56, %57 : vector<1x128xf32>
    %59 = math.rsqrt %58 : vector<1x128xf32>
    %60 = vector.broadcast %59 : vector<1x128xf32> to vector<128x128xf32>
    %61 = arith.mulf %51, %60 : vector<128x128xf32>
    %cst_24 = arith.constant 0.000000e+00 : f32
    %62 = vector.broadcast %cst_24 : f32 to vector<128x128xf32>
    %63 = arith.maximumf %61, %62 : vector<128x128xf32>
    %64 = arith.truncf %63 : vector<128x128xf32> to vector<128x128xbf16>
    %c1040 = arith.constant 1040 : index
    %c0_25 = arith.constant 0 : index
    %65 = vector.load %arg1[%c1040, %c0_25] : memref<1168x128xbf16, #tpu.memory_space<vmem>>, vector<128x128xbf16>
    %cst_26 = arith.constant dense<0.000000e+00> : vector<128x128xf32>
    %66 = tpu.matmul %64, %65, %cst_26 {dimension_numbers = #tpu.dot_dimension_numbers<[1], [0], [0], [1], [0, 0, 1, 1], [], []>} : vector<128x128xbf16>, vector<128x128xbf16>, vector<128x128xf32> -> vector<128x128xf32>
    %cst_27 = arith.constant dense<0.000000e+00> : vector<128xf32>
    %67 = vector.multi_reduction <add>, %66, %cst_27 [0] : vector<128x128xf32> to vector<128xf32>
    %68 = vector.shape_cast %67 : vector<128xf32> to vector<1x128xf32>
    %cst_28 = arith.constant 1.280000e+02 : f32
    %69 = vector.broadcast %cst_28 : f32 to vector<1x128xf32>
    %70 = arith.divf %68, %69 : vector<1x128xf32>
    %71 = vector.broadcast %70 : vector<1x128xf32> to vector<128x128xf32>
    %72 = arith.subf %66, %71 : vector<128x128xf32>
    %73 = arith.mulf %72, %72 : vector<128x128xf32>
    %cst_29 = arith.constant dense<0.000000e+00> : vector<128xf32>
    %74 = vector.multi_reduction <add>, %73, %cst_29 [0] : vector<128x128xf32> to vector<128xf32>
    %75 = vector.shape_cast %74 : vector<128xf32> to vector<1x128xf32>
    %cst_30 = arith.constant 1.280000e+02 : f32
    %76 = vector.broadcast %cst_30 : f32 to vector<1x128xf32>
    %77 = arith.divf %75, %76 : vector<1x128xf32>
    %cst_31 = arith.constant 9.99999974E-6 : f32
    %78 = vector.broadcast %cst_31 : f32 to vector<1x128xf32>
    %79 = arith.addf %77, %78 : vector<1x128xf32>
    %80 = math.rsqrt %79 : vector<1x128xf32>
    %81 = vector.broadcast %80 : vector<1x128xf32> to vector<128x128xf32>
    %82 = arith.mulf %72, %81 : vector<128x128xf32>
    %cst_32 = arith.constant 0.000000e+00 : f32
    %83 = vector.broadcast %cst_32 : f32 to vector<128x128xf32>
    %84 = arith.maximumf %82, %83 : vector<128x128xf32>
    %c0_33 = arith.constant 0 : index
    %c0_34 = arith.constant 0 : index
    %85 = vector.load %arg2[%c0_33, %c0_34] : memref<128x128xf32, #tpu.memory_space<vmem>>, vector<128x128xf32>
    tpu.vector_store %arg2[%c0_33, %c0_34], %84 {strides = array<i32>} : memref<128x128xf32, #tpu.memory_space<vmem>>, vector<128x128xf32>,
    return
  }
}

</mosaic_0001>

<bundles_post_ra>
// kernel: fc_model_forward.1
= control target key start
LH: loop header
LB: loop body
LE: loop exit
PB: predicated region body
PF: predicated region fallthrough
CT: control target
= control target key end

     0   :  { %vm572_vm0 = vcmask 130048   ;;  %s3304_s1 = inlined_call_operand.vmem [shape: bf16[1168,128], index: 1, kind: input, shape index: {}]   ;;  %s3305_s0 = inlined_call_operand.vmem [shape: f32[128,784], index: 0, kind: input, shape index: {}]   ;;  %s3306_s2 = inlined_call_operand.vmem [shape: f32[128,128], index: 2, kind: output, shape index: {}]  }
   0x1   :  { %v2397_v0 = vld [vmem:[%s3304_s1 + $0x40] sm:$0xff]   ;;  %v2401_v4 = vld [vmem:[%s3304_s1 + $0x48] sm:$0xff]   ;;  %v2405_v8 = vld [vmem:[%s3304_s1 + $0x50] sm:$0xff]  }
   0x2   :  { %v2398_v1 = vld [vmem:[%s3304_s1 + $0xc0] sm:$0xff]   ;;  %2034 = vmatprep.subr.bf16.mxu0 %v2397_v0  ;;  %v2402_v5 = vld [vmem:[%s3304_s1 + $0xc8] sm:$0xff]   ;;  %v2406_v9 = vld [vmem:[%s3304_s1 + $0xd0] sm:$0xff]  }
   0x3   :  { %v2399_v2 = vld [vmem:[%s3304_s1] sm:$0xff]   ;;  %2098 = vmatprep.subr.bf16.mxu1 %v2398_v1  ;;  %v2403_v6 = vld [vmem:[%s3304_s1 + $0x8] sm:$0xff]   ;;  %v2407_v10 = vld [vmem:[%s3304_s1 + $0x10] sm:$0xff]  }
   0x4   :  { %v2400_v3 = vld [vmem:[%s3304_s1 + $0x80] sm:$0xff]   ;;  %2035 = vmatpush3.bf16.msra.mxu0 %v2399_v2  ;;  %v2404_v7 = vld [vmem:[%s3304_s1 + $0x88] sm:$0xff]   ;;  %v2408_v11 = vld [vmem:[%s3304_s1 + $0x90] sm:$0xff]  }
   0x5   :  { %2099 = vmatpush3.bf16.msra.mxu1 %v2400_v3  ;;  %2036 = vmatprep.subr.bf16.mxu0 %v2401_v4  ;;  %v2409_v12 = vld [vmem:[%s3304_s1 + $0x58] sm:$0xff]   ;;  %v2413_v16 = vld [vmem:[%s3304_s1 + $0x60] sm:$0xff]   ;;  %v2417_v20 = vld [vmem:[%s3304_s1 + $0x68] sm:$0xff]  }
   0x6   :  { %2100 = vmatprep.subr.bf16.mxu1 %v2402_v5  ;;  %v2410_v13 = vld [vmem:[%s3304_s1 + $0xd8] sm:$0xff]   ;;  %v2414_v17 = vld [vmem:[%s3304_s1 + $0xe0] sm:$0xff]   ;;  %v2418_v21 = vld [vmem:[%s3304_s1 + $0xe8] sm:$0xff]  }
   0x7   :  { %v2411_v14 = vld [vmem:[%s3304_s1 + $0x18] sm:$0xff]   ;;  %v2415_v18 = vld [vmem:[%s3304_s1 + $0x20] sm:$0xff]   ;;  %v2419_v22 = vld [vmem:[%s3304_s1 + $0x28] sm:$0xff]  }
   0x8   :  { %2037 = vmatpush3.bf16.msra.mxu0 %v2403_v6  ;;  %v2412_v15 = vld [vmem:[%s3304_s1 + $0x98] sm:$0xff]   ;;  %v2416_v19 = vld [vmem:[%s3304_s1 + $0xa0] sm:$0xff]   ;;  %v2420_v23 = vld [vmem:[%s3304_s1 + $0xa8] sm:$0xff]  }
   0x9   :  { %2101 = vmatpush3.bf16.msra.mxu1 %v2404_v7  ;;  %2038 = vmatprep.subr.bf16.mxu0 %v2405_v8  ;;  %v2421_v24 = vld [vmem:[%s3304_s1 + $0x70] sm:$0xff]   ;;  %v2425_v28 = vld [vmem:[%s3304_s1 + $0x78] sm:$0xff]   ;;  %v13_v32 = vld [vmem:[%s3305_s0 + $0x8] sm:$0xff] }
   0xa   :  { %2102 = vmatprep.subr.bf16.mxu1 %v2406_v9  ;;  %v2422_v25 = vld [vmem:[%s3304_s1 + $0xf0] sm:$0xff]   ;;  %v2426_v29 = vld [vmem:[%s3304_s1 + $0xf8] sm:$0xff]   ;;  %v20_v33 = vld [vmem:[%s3305_s0 + $0x40] sm:$0xff] }
   0xb   :  { %v2423_v26 = vld [vmem:[%s3304_s1 + $0x30] sm:$0xff]   ;;  %v2427_v30 = vld [vmem:[%s3304_s1 + $0x38] sm:$0xff]   ;;  %v125_v35 = vpack.c.bf16 %v20_v33, %v13_v32  ;;  %v12_v37 = vld [vmem:[%s3305_s0] sm:$0xff] }
   0xc   :  { %2039 = vmatpush3.bf16.msra.mxu0 %v2407_v10  ;;  %v2424_v27 = vld [vmem:[%s3304_s1 + $0xb0] sm:$0xff]   ;;  %v2428_v31 = vld [vmem:[%s3304_s1 + $0xb8] sm:$0xff]   ;;  %v21_v42 = vld [vmem:[%s3305_s0 + $0x48] sm:$0xff] }
   0xd   :  { %2103 = vmatpush3.bf16.msra.mxu1 %v2408_v11  ;;  %2040 = vmatprep.subr.bf16.mxu0 %v2409_v12  ;;  %v15_v34 = vld [vmem:[%s3305_s0 + $0x18] sm:$0xff]  ;;  %v22_v36 = vld [vmem:[%s3305_s0 + $0x50] sm:$0xff]  ;;  %v2429_v44 = vld [vmem:[%s3304_s1 + $0x140] sm:$0xff]  }
   0xe   :  { %2104 = vmatprep.subr.bf16.mxu1 %v2410_v13  ;;  %v19_v38 = vld [vmem:[%s3305_s0 + $0x38] sm:$0xff]  ;;  %v127_v39 = vpack.c.bf16 %v22_v36, %v15_v34  ;;  %v14_v41 = vld [vmem:[%s3305_s0 + $0x10] sm:$0xff]  ;;  %629 = vmatprep.mubr.bf16.mxu0 %v125_v35  ;;  %v2430_v45 = vld [vmem:[%s3304_s1 + $0x100] sm:$0xff]  }
   0xf   :  { %v124_v40 = vpack.c.bf16 %v19_v38, %v12_v37  ;;  %v126_v43 = vpack.c.bf16 %v21_v42, %v14_v41  ;;  %v27_v46 = vld [vmem:[%s3305_s0 + $0x78] sm:$0xff]  ;;  %v34_v47 = vld [vmem:[%s3305_s0 + $0xb0] sm:$0xff]  ;;  %v29_v48 = vld [vmem:[%s3305_s0 + $0x88] sm:$0xff] }
  0x10   :  { %2041 = vmatpush3.bf16.msra.mxu0 %v2411_v14  ;;  %726 = vmatprep.mubr.bf16.mxu1 %v127_v39  ;;  %v36_v49 = vld [vmem:[%s3305_s0 + $0xc0] sm:$0xff]  ;;  %v132_v50 = vpack.c.bf16 %v34_v47, %v27_v46  ;;  %v26_v52 = vld [vmem:[%s3305_s0 + $0x70] sm:$0xff]  ;;  %v33_v53 = vld [vmem:[%s3305_s0 + $0xa8] sm:$0xff] }
  0x11   :  { %2105 = vmatpush3.bf16.msra.mxu1 %v2412_v15  ;;  %2042 = vmatprep.subr.bf16.mxu0 %v2413_v16  ;;  %v134_v51 = vpack.c.bf16 %v36_v49, %v29_v48  ;;  %v28_v54 = vld [vmem:[%s3305_s0 + $0x80] sm:$0xff]  ;;  %v35_v55 = vld [vmem:[%s3305_s0 + $0xb8] sm:$0xff]  ;;  %v131_v56 = vpack.c.bf16 %v33_v53, %v26_v52  ;;  %v2431_v57 = vld [vmem:[%s3304_s1 + $0x148] sm:$0xff]  }
  0x12   :  { %2106 = vmatprep.subr.bf16.mxu1 %v2414_v17  ;;  %v133_v58 = vpack.c.bf16 %v35_v55, %v28_v54  ;;  %v2432_v59 = vld [vmem:[%s3304_s1 + $0x108] sm:$0xff]   ;;  %v48_v61 = vld [vmem:[%s3305_s0 + $0x120] sm:$0xff]  ;;  %v43_v63 = vld [vmem:[%s3305_s0 + $0xf8] sm:$0xff] }
  0x13   :  { %v41_v60 = vld [vmem:[%s3305_s0 + $0xe8] sm:$0xff]  ;;  %v50_v0 = vld [vmem:[%s3305_s0 + $0x130] sm:$0xff]  ;;  %v40_v2 = vld [vmem:[%s3305_s0 + $0xe0] sm:$0xff] }
  0x14   :  { %2043 = vmatpush3.bf16.msra.mxu0 %v2415_v18  ;;  %v139_v62 = vpack.c.bf16 %v48_v61, %v41_v60  ;;  %v141_v1 = vpack.c.bf16 %v50_v0, %v43_v63  ;;  %v47_v3 = vld [vmem:[%s3305_s0 + $0x118] sm:$0xff]  ;;  %v42_v4 = vld [vmem:[%s3305_s0 + $0xf0] sm:$0xff]  ;;  %v49_v7 = vld [vmem:[%s3305_s0 + $0x128] sm:$0xff] }
  0x15   :  { %2107 = vmatpush3.bf16.msra.mxu1 %v2416_v19  ;;  %2044 = vmatprep.subr.bf16.mxu0 %v2417_v20  ;;  %v2433_v5 = vld [vmem:[%s3304_s1 + $0x150] sm:$0xff]   ;;  %v55_v8 = vld [vmem:[%s3305_s0 + $0x158] sm:$0xff]  ;;  %v57_v10 = vld [vmem:[%s3305_s0 + $0x168] sm:$0xff]  ;;  %v138_v12 = vpack.c.bf16 %v47_v3, %v40_v2  ;;  %v140_v13 = vpack.c.bf16 %v49_v7, %v42_v4 }
  0x16   :  { %2108 = vmatprep.subr.bf16.mxu1 %v2418_v21  ;;  %v2434_v6 = vld [vmem:[%s3304_s1 + $0x110] sm:$0xff]   ;;  %v64_v11 = vld [vmem:[%s3305_s0 + $0x1a0] sm:$0xff]  ;;  %v2435_v15 = vld [vmem:[%s3304_s1 + $0x158] sm:$0xff]  }
  0x17   :  { %v62_v9 = vld [vmem:[%s3305_s0 + $0x190] sm:$0xff]  ;;  %v148_v16 = vpack.c.bf16 %v64_v11, %v57_v10  ;;  %v2436_v17 = vld [vmem:[%s3304_s1 + $0x118] sm:$0xff]   ;;  %v61_v19 = vld [vmem:[%s3305_s0 + $0x188] sm:$0xff] }
  0x18   :  { %2045 = vmatpush3.bf16.msra.mxu0 %v2419_v22  ;;  %v146_v14 = vpack.c.bf16 %v62_v9, %v55_v8  ;;  %v54_v18 = vld [vmem:[%s3305_s0 + $0x150] sm:$0xff]  ;;  %v56_v20 = vld [vmem:[%s3305_s0 + $0x160] sm:$0xff]  ;;  %v63_v21 = vld [vmem:[%s3305_s0 + $0x198] sm:$0xff] }
  0x19   :  { %2109 = vmatpush3.bf16.msra.mxu1 %v2420_v23  ;;  %2046 = vmatprep.subr.bf16.mxu0 %v2421_v24  ;;  %v69_v22 = vld [vmem:[%s3305_s0 + $0x1c8] sm:$0xff]  ;;  %v76_v23 = vld [vmem:[%s3305_s0 + $0x200] sm:$0xff]  ;;  %v71_v24 = vld [vmem:[%s3305_s0 + $0x1d8] sm:$0xff] }
  0x1a   :  { %2110 = vmatprep.subr.bf16.mxu1 %v2422_v25  ;;  %v78_v25 = vld [vmem:[%s3305_s0 + $0x210] sm:$0xff]  ;;  %v2440_v33 = vld [vmem:[%s3304_s1 + $0x168] sm:$0xff]   ;;  %v68_v35 = vld [vmem:[%s3305_s0 + $0x1c0] sm:$0xff] }
  0x1b   :  { %v155_v32 = vpack.c.bf16 %v78_v25, %v71_v24  ;;  %v2441_v34 = vld [vmem:[%s3304_s1 + $0x128] sm:$0xff]   ;;  %v75_v36 = vld [vmem:[%s3305_s0 + $0x1f8] sm:$0xff]  ;;  %v70_v37 = vld [vmem:[%s3305_s0 + $0x1d0] sm:$0xff] }
  0x1c   :  { %2047 = vmatpush3.bf16.msra.mxu0 %v2423_v26  ;;  %v2437_v26 = vld [vmem:[%s3304_s1 + $0x160] sm:$0xff]   ;;  %v77_v38 = vld [vmem:[%s3305_s0 + $0x208] sm:$0xff]  ;;  %v83_v39 = vld [vmem:[%s3305_s0 + $0x238] sm:$0xff] }
  0x1d   :  { %2111 = vmatpush3.bf16.msra.mxu1 %v2424_v27  ;;  %2048 = vmatprep.subr.bf16.mxu0 %v2425_v28  ;;  %v2438_v27 = vld [vmem:[%s3304_s1 + $0x180] sm:$0xff]   ;;  %v145_v28 = vpack.c.bf16 %v61_v19, %v54_v18  ;;  %v85_v41 = vld [vmem:[%s3305_s0 + $0x248] sm:$0xff]  ;;  %v2443_v47 = vld [vmem:[%s3304_s1 + $0x130] sm:$0xff]  }
  0x1e   :  { %2112 = vmatprep.subr.bf16.mxu1 %v2426_v29  ;;  %v2439_v29 = vld [vmem:[%s3304_s1 + $0x120] sm:$0xff]   ;;  %v82_v49 = vld [vmem:[%s3305_s0 + $0x230] sm:$0xff]  ;;  %v91_v52 = vld [vmem:[%s3305_s0 + $0x278] sm:$0xff] }
  0x1f   :  { %v92_v42 = vld [vmem:[%s3305_s0 + $0x280] sm:$0xff]  ;;  %v2444_v53 = vld [vmem:[%s3304_s1 + $0x178] sm:$0xff]   ;;  %v97_v54 = vld [vmem:[%s3305_s0 + $0x2a8] sm:$0xff] }
  0x20   :  { %2049 = vmatpush3.bf16.msra.mxu0 %v2427_v30  ;;  %v147_v30 = vpack.c.bf16 %v63_v21, %v56_v20  ;;  %v162_v48 = vpack.c.bf16 %v92_v42, %v85_v41  ;;  %v104_v55 = vld [vmem:[%s3305_s0 + $0x2e0] sm:$0xff]  ;;  %v103_v0 = vld [vmem:[%s3305_s0 + $0x2d8] sm:$0xff]  ;;  %v105_v2 = vld [vmem:[%s3305_s0 + $0x2e8] sm:$0xff] }
  0x21   :  { %2113 = vmatpush3.bf16.msra.mxu1 %v2428_v31  ;;  %2162 = vmatprep.subr.bf16.mxu0 %v2429_v44  ;;  %v153_v31 = vpack.c.bf16 %v76_v23, %v69_v22  ;;  %v2442_v44 = vld [vmem:[%s3304_s1 + $0x170] sm:$0xff]   ;;  %v167_v61 = vpack.c.bf16 %v104_v55, %v97_v54  ;;  %v96_v63 = vld [vmem:[%s3305_s0 + $0x2a0] sm:$0xff]  ;;  %v111_v3 = vld [vmem:[%s3305_s0 + $0x318] sm:$0xff] }
  0x22   :  { %2283 = vmatprep.subr.bf16.mxu1 %v2438_v27  ;;  %v118_v4 = vld [vmem:[%s3305_s0 + $0x350] sm:$0xff]  ;;  %v166_v7 = vpack.c.bf16 %v103_v0, %v96_v63  ;;  %v25_v18 = vld [vmem:[%s3305_s0 + $0x68] sm:$0xff]  ;;  %v16_v23 = vld [vmem:[%s3305_s0 + $0x20] sm:$0xff] }
  0x23   :  { %630 = vmatmul.mubr.bf16.vlgmr.msra.gmra.mrb[0].mxu0 %v124_v40  ;;  %v90_v40 = vld [vmem:[%s3305_s0 + $0x270] sm:$0xff]  ;;  %v174_v9 = vpack.c.bf16 %v118_v4, %v111_v3  ;;  %v23_v24 = vld [vmem:[%s3305_s0 + $0x58] sm:$0xff]  ;;  %v32_v25 = vld [vmem:[%s3305_s0 + $0xa0] sm:$0xff] }
  0x24   :  { %727 = vmatmul.mubr.bf16.vlgmr.msra.gmra.mrb[0].mxu1 %v126_v43  ;;  %2163 = vmatpush3.bf16.msra.mxu0 %v2430_v45  ;;  %v152_v43 = vpack.c.bf16 %v75_v36, %v68_v35  ;;  %v154_v45 = vpack.c.bf16 %v77_v38, %v70_v37  ;;  %v160_v46 = vpack.c.bf16 %v90_v40, %v83_v39  ;;  %v110_v11 = vld [vmem:[%s3305_s0 + $0x310] sm:$0xff]  ;;  %v37_v36 = vld [vmem:[%s3305_s0 + $0xc8] sm:$0xff]  ;;  %v52_v38 = vld [vmem:[%s3305_s0 + $0x140] sm:$0xff] }
  0x25   :  { %637 = vmatprep.mubr.bf16.mxu0 %v132_v50  ;;  %734 = vmatprep.mubr.bf16.mxu1 %v134_v51  ;;  %v89_v50 = vld [vmem:[%s3305_s0 + $0x268] sm:$0xff]  ;;  %v84_v51 = vld [vmem:[%s3305_s0 + $0x240] sm:$0xff]  ;;  %v30_v35 = vld [vmem:[%s3305_s0 + $0x90] sm:$0xff] }
  0x26   :  { %2164 = vmatprep.subr.bf16.mxu0 %v2431_v57  ;;  %2284 = vmatpush3.bf16.msra.mxu1 %v2438_v27  ;;  %v99_v57 = vld [vmem:[%s3305_s0 + $0x2b8] sm:$0xff]  ;;  %v161_v60 = vpack.c.bf16 %v91_v52, %v84_v51  ;;  %v45_v37 = vld [vmem:[%s3305_s0 + $0x108] sm:$0xff]  ;;  %v60_v39 = vld [vmem:[%s3305_s0 + $0x180] sm:$0xff] }
  0x27   :  { %v31_v27 = vld [vmem:[%s3305_s0 + $0x98] sm:$0xff]  ;;  %v74_v41 = vld [vmem:[%s3305_s0 + $0x1f0] sm:$0xff]  ;;  %v81_v42 = vld [vmem:[%s3305_s0 + $0x228] sm:$0xff] }
  0x28   :  { %2165 = vmatpush3.bf16.msra.mxu0 %v2432_v59  ;;  %v159_v59 = vpack.c.bf16 %v89_v50, %v82_v49  ;;  %v67_v40 = vld [vmem:[%s3305_s0 + $0x1b8] sm:$0xff]  ;;  %v66_v50 = vld [vmem:[%s3305_s0 + $0x1b0] sm:$0xff]  ;;  %v88_v51 = vld [vmem:[%s3305_s0 + $0x260] sm:$0xff] }
  0x29   :  { %2166 = vmatprep.subr.bf16.mxu0 %v2433_v5  ;;  %v113_v5 = vld [vmem:[%s3305_s0 + $0x328] sm:$0xff]  ;;  %v59_v49 = vld [vmem:[%s3305_s0 + $0x178] sm:$0xff]  ;;  %v116_v63 = vld [vmem:[%s3305_s0 + $0x340] sm:$0xff] }
  0x2a   :  { %v95_v52 = vld [vmem:[%s3305_s0 + $0x298] sm:$0xff]  ;;  %v109_v54 = vld [vmem:[%s3305_s0 + $0x308] sm:$0xff]  ;;  %v72_v4 = vld [vmem:[%s3305_s0 + $0x1e0] sm:$0xff] }
  0x2b   :  { %638 = vmatmul.mubr.bf16.gmra.mrb[4].mxu0 %v131_v56  ;;  %v2445_v56 = vld [vmem:[%s3304_s1 + $0x138] sm:$0xff]  }
  0x2c   :  { %735 = vmatmul.mubr.bf16.gmra.mrb[4].mxu1 %v133_v58  ;;  %645 = vmatprep.mubr.bf16.mxu0 %v139_v62  ;;  %v106_v58 = vld [vmem:[%s3305_s0 + $0x2f0] sm:$0xff]  ;;  %v123_v0 = vld [vmem:[%s3305_s0 + $0x378] sm:$0xff] }
  0x2d   :  { %742 = vmatprep.mubr.bf16.mxu1 %v141_v1  ;;  %2167 = vmatpush3.bf16.msra.mxu0 %v2434_v6  ;;  %v169_v62 = vpack.c.bf16 %v106_v58, %v99_v57  ;;  %v98_v1 = vld [vmem:[%s3305_s0 + $0x2b0] sm:$0xff]  ;;  %v120_v6 = vld [vmem:[%s3305_s0 + $0x360] sm:$0xff]  ;;  %v165_v57 = vpack.c.bf16 %v95_v52, %v88_v51  ;;  %v179_v3 = vpack.c.bf16 %v123_v0, %v116_v63  ;;  %v2446_v0 = vld [vmem:[%s3304_s1 + $0x188] sm:$0xff]  }
  0x2e   :  { %2168 = vmatprep.subr.bf16.mxu0 %v2435_v15  ;;  %v168_v8 = vpack.c.bf16 %v105_v2, %v98_v1  ;;  %v176_v10 = vpack.c.bf16 %v120_v6, %v113_v5  ;;  %v17_v15 = vld [vmem:[%s3305_s0 + $0x28] sm:$0xff]  ;;  %v79_v5 = vld [vmem:[%s3305_s0 + $0x218] sm:$0xff]  ;;  %2301 = vmatprep.subr.bf16.mxu1 %v2446_v0 }
  0x2f   :  { %v87_v6 = vld [vmem:[%s3305_s0 + $0x258] sm:$0xff] }
  0x31   :  { %2169 = vmatpush3.bf16.msra.mxu0 %v2436_v17  ;;  %v18_v17 = vld [vmem:[%s3305_s0 + $0x30] sm:$0xff] }
  0x32   :  { %2170 = vmatprep.subr.bf16.mxu0 %v2437_v26  ;;  %v130_v22 = vpack.c.bf16 %v25_v18, %v18_v17  ;;  %v39_v26 = vld [vmem:[%s3305_s0 + $0xd8] sm:$0xff] }
  0x33   :  { %646 = vmatmul.mubr.bf16.gmra.mrb[8].mxu0 %v138_v12  ;;  %v117_v12 = vld [vmem:[%s3305_s0 + $0x348] sm:$0xff]  ;;  %v107_v17 = vld [vmem:[%s3305_s0 + $0x2f8] sm:$0xff] }
  0x34   :  { %743 = vmatmul.mubr.bf16.gmra.mrb[8].mxu1 %v140_v13  ;;  %653 = vmatprep.mubr.bf16.mxu0 %v146_v14  ;;  %v112_v13 = vld [vmem:[%s3305_s0 + $0x320] sm:$0xff]  ;;  %v119_v14 = vld [vmem:[%s3305_s0 + $0x358] sm:$0xff]  ;;  %v173_v19 = vpack.c.bf16 %v117_v12, %v110_v11  ;;  %v93_v11 = vld [vmem:[%s3305_s0 + $0x288] sm:$0xff] }
  0x35   :  { %750 = vmatprep.mubr.bf16.mxu1 %v148_v16  ;;  %2171 = vmatpush3.bf16.msra.mxu0 %v2439_v29  ;;  %v24_v16 = vld [vmem:[%s3305_s0 + $0x60] sm:$0xff]  ;;  %v175_v20 = vpack.c.bf16 %v119_v14, %v112_v13  ;;  %v46_v29 = vld [vmem:[%s3305_s0 + $0x110] sm:$0xff]  ;;  %v101_v12 = vld [vmem:[%s3305_s0 + $0x2c8] sm:$0xff] }
  0x36   :  { %2172 = vmatprep.subr.bf16.mxu0 %v2440_v33  ;;  %v129_v21 = vpack.c.bf16 %v24_v16, %v17_v15  ;;  %v108_v13 = vld [vmem:[%s3305_s0 + $0x300] sm:$0xff]  ;;  %v115_v18 = vld [vmem:[%s3305_s0 + $0x338] sm:$0xff] }
  0x37   :  { %v171_v15 = vpack.c.bf16 %v108_v13, %v101_v12  ;;  %v100_v16 = vld [vmem:[%s3305_s0 + $0x2c0] sm:$0xff] }
  0x39   :  { %2173 = vmatpush3.bf16.msra.mxu0 %v2441_v34 }
  0x3a   :  { %2174 = vmatprep.subr.bf16.mxu0 %v2442_v44  ;;  %v143_v44 = vpack.c.bf16 %v52_v38, %v45_v37 }
  0x3b   :  { %654 = vmatmul.mubr.bf16.gmra.mrb[12].mxu0 %v145_v28  ;;  %v38_v28 = vld [vmem:[%s3305_s0 + $0xd0] sm:$0xff] }
  0x3c   :  { %751 = vmatmul.mubr.bf16.gmra.mrb[12].mxu1 %v147_v30  ;;  %661 = vmatprep.mubr.bf16.mxu0 %v153_v31  ;;  %v53_v30 = vld [vmem:[%s3305_s0 + $0x148] sm:$0xff]  ;;  %v128_v31 = vpack.c.bf16 %v23_v24, %v16_v23  ;;  %v136_v33 = vpack.c.bf16 %v38_v28, %v31_v27 }
  0x3d   :  { %758 = vmatprep.mubr.bf16.mxu1 %v155_v32  ;;  %2175 = vmatpush3.bf16.msra.mxu0 %v2443_v47  ;;  %v137_v32 = vpack.c.bf16 %v39_v26, %v32_v25  ;;  %v144_v34 = vpack.c.bf16 %v53_v30, %v46_v29  ;;  %v44_v47 = vld [vmem:[%s3305_s0 + $0x100] sm:$0xff]  ;;  %v121_v23 = vld [vmem:[%s3305_s0 + $0x368] sm:$0xff] }
  0x3e   :  { %2176 = vmatprep.subr.bf16.mxu0 %v2444_v53  ;;  %v102_v53 = vld [vmem:[%s3305_s0 + $0x2d0] sm:$0xff] }
  0x3f   :  { %v172_v58 = vpack.c.bf16 %v109_v54, %v102_v53 }
  0x41   :  { %2177 = vmatpush3.bf16.msra.mxu0 %v2445_v56  ;;  %v150_v56 = vpack.c.bf16 %v66_v50, %v59_v49 }
  0x43   :  { %662 = vmatmul.mubr.bf16.gmra.mrb[16].mxu0 %v152_v43  ;;  %v135_v43 = vpack.c.bf16 %v37_v36, %v30_v35 }
  0x44   :  { %759 = vmatmul.mubr.bf16.gmra.mrb[16].mxu1 %v154_v45  ;;  %669 = vmatprep.mubr.bf16.mxu0 %v160_v46  ;;  %v151_v45 = vpack.c.bf16 %v67_v40, %v60_v39  ;;  %v158_v46 = vpack.c.bf16 %v81_v42, %v74_v41 }
  0x45   :  { %766 = vmatprep.mubr.bf16.mxu1 %v162_v48  ;;  %v51_v48 = vld [vmem:[%s3305_s0 + $0x138] sm:$0xff] }
  0x46   :  { %v142_v55 = vpack.c.bf16 %v51_v48, %v44_v47 }
  0x4b   :  { %670 = vmatmul.mubr.bf16.gmra.mrb[20].mxu0 %v159_v59  ;;  %v58_v59 = vld [vmem:[%s3305_s0 + $0x170] sm:$0xff] }
  0x4c   :  { %767 = vmatmul.mubr.bf16.gmra.mrb[20].mxu1 %v161_v60  ;;  %677 = vmatprep.mubr.bf16.mxu0 %v167_v61  ;;  %v65_v60 = vld [vmem:[%s3305_s0 + $0x1a8] sm:$0xff] }
  0x4d   :  { %774 = vmatprep.mubr.bf16.mxu1 %v169_v62  ;;  %v73_v61 = vld [vmem:[%s3305_s0 + $0x1e8] sm:$0xff]  ;;  %v80_v62 = vld [vmem:[%s3305_s0 + $0x220] sm:$0xff]  ;;  %v149_v1 = vpack.c.bf16 %v65_v60, %v58_v59 }
  0x4e   :  { %v157_v2 = vpack.c.bf16 %v80_v62, %v73_v61 }
  0x53   :  { %678 = vmatmul.mubr.bf16.gmra.mrb[24].mxu0 %v166_v7  ;;  %v94_v7 = vld [vmem:[%s3305_s0 + $0x290] sm:$0xff] }
  0x54   :  { %775 = vmatmul.mubr.bf16.gmra.mrb[24].mxu1 %v168_v8  ;;  %685 = vmatprep.mubr.bf16.mxu0 %v174_v9  ;;  %v156_v8 = vpack.c.bf16 %v79_v5, %v72_v4  ;;  %v164_v9 = vpack.c.bf16 %v94_v7, %v87_v6  ;;  %v2448_v6 = vld [vmem:[%s3304_s1 + $0x198] sm:$0xff]  }
  0x55   :  { %782 = vmatprep.mubr.bf16.mxu1 %v176_v10  ;;  %v86_v10 = vld [vmem:[%s3305_s0 + $0x250] sm:$0xff] }
  0x56   :  { %v163_v14 = vpack.c.bf16 %v93_v11, %v86_v10 }
  0x5b   :  { %686 = vmatmul.mubr.bf16.gmra.mrb[28].mxu0 %v173_v19  ;;  %v122_v19 = vld [vmem:[%s3305_s0 + $0x370] sm:$0xff] }
  0x5c   :  { %783 = vmatmul.mubr.bf16.gmra.mrb[28].mxu1 %v175_v20  ;;  %823 = vmatprep.mubr.bf16.mxu0 %v129_v21  ;;  %v170_v20 = vpack.c.bf16 %v107_v17, %v100_v16  ;;  %v178_v21 = vpack.c.bf16 %v122_v19, %v115_v18  ;;  %v2449_v17 = vld [vmem:[%s3304_s1 + $0x1a0] sm:$0xff]  }
  0x5d   :  { %2285 = vmatprep.mubr.msk.bf16.mxu1 %vm572_vm0, %v130_v22  ;;  %v114_v22 = vld [vmem:[%s3305_s0 + $0x330] sm:$0xff] }
  0x5e   :  { %v177_v24 = vpack.c.bf16 %v121_v23, %v114_v22  ;;  %v2450_v22 = vld [vmem:[%s3304_s1 + $0x1a8] sm:$0xff]  }
  0x63   :  { %824 = vmatmul.mubr.bf16.vlgmr.msra.gmra.mrb[32].mxu0 %v128_v31 }
  0x64   :  { %2286 = vmatmul.mubr.msk.bf16.vlgmr.msra.gmra.mrb[32].mxu1 %vm572_vm0, %v137_v32  ;;  %831 = vmatprep.mubr.bf16.mxu0 %v136_v33 }
  0x65   :  { %2289 = vmatprep.mubr.msk.bf16.mxu1 %vm572_vm0, %v144_v34  ;;  %2302 = vmatpush3.bf16.msra.mxu1 %v2446_v0 }
  0x6b   :  { %832 = vmatmul.mubr.bf16.gmra.mrb[36].mxu0 %v135_v43 }
  0x6c   :  { %839 = vmatprep.mubr.bf16.mxu0 %v143_v44  ;;  %2290 = vmatmul.mubr.msk.bf16.gmra.mrb[36].mxu1 %vm572_vm0, %v151_v45 }
  0x6d   :  { %2293 = vmatprep.mubr.msk.bf16.mxu1 %vm572_vm0, %v158_v46 }
  0x73   :  { %840 = vmatmul.mubr.bf16.gmra.mrb[40].mxu0 %v142_v55 }
  0x74   :  { %847 = vmatprep.mubr.bf16.mxu0 %v150_v56  ;;  %2294 = vmatmul.mubr.msk.bf16.gmra.mrb[40].mxu1 %vm572_vm0, %v165_v57 }
  0x75   :  { %2297 = vmatprep.mubr.msk.bf16.mxu1 %vm572_vm0, %v172_v58 }
  0x7b   :  { %848 = vmatmul.mubr.bf16.gmra.mrb[44].mxu0 %v149_v1  ;;  %v2447_v1 = vld [vmem:[%s3304_s1 + $0x190] sm:$0xff]  }
  0x7c   :  { %855 = vmatprep.mubr.bf16.mxu0 %v157_v2  ;;  %2298 = vmatmul.mubr.msk.bf16.gmra.mrb[44].mxu1 %vm572_vm0, %v179_v3 }
  0x7d   :  { %2303 = vmatprep.subr.bf16.mxu1 %v2447_v1 }
  0x7e   :  { %2304 = vmatpush3.bf16.msra.mxu1 %v2447_v1 }
  0x7f   :  { %2305 = vmatprep.subr.bf16.mxu1 %v2448_v6 }
  0x82   :  { %2306 = vmatpush3.bf16.msra.mxu1 %v2448_v6 }
  0x83   :  { %856 = vmatmul.mubr.bf16.gmra.mrb[48].mxu0 %v156_v8  ;;  %2307 = vmatprep.subr.bf16.mxu1 %v2449_v17 }
  0x84   :  { %863 = vmatprep.mubr.bf16.mxu0 %v164_v9 }
  0x86   :  { %2308 = vmatpush3.bf16.msra.mxu1 %v2449_v17 }
  0x87   :  { %2309 = vmatprep.subr.bf16.mxu1 %v2450_v22 }
  0x8a   :  { %2310 = vmatpush3.bf16.msra.mxu1 %v2450_v22 }
  0x8b   :  { %864 = vmatmul.mubr.bf16.gmra.mrb[52].mxu0 %v163_v14 }
  0x8c   :  { %871 = vmatprep.mubr.bf16.mxu0 %v171_v15 }
  0x93   :  { %872 = vmatmul.mubr.bf16.gmra.mrb[56].mxu0 %v170_v20 }
  0x94   :  { %879 = vmatprep.mubr.bf16.mxu0 %v178_v21 }
  0x9b   :  { %880 = vmatmul.mubr.bf16.gmra.mrb[60].mxu0 %v177_v24 }
  0xf6   :  { %v2050_v25 = vpop.f32.mrb[0].mxu0 }
  0xf7   :  { %v2114_v26 = vpop.f32.mrb[0].mxu1  ;;  %v2051_v27 = vpop.f32.mrb[1].mxu0 }
  0xf8   :  { %v2052_v28 = vadd.f32 %v2051_v27, %v2050_v25  ;;  %v2115_v29 = vpop.f32.mrb[1].mxu1  ;;  %v2053_v30 = vpop.f32.mrb[2].mxu0 }
  0xf9   :  { %v2116_v31 = vadd.f32 %v2115_v29, %v2114_v26  ;;  %v2117_v32 = vpop.f32.mrb[2].mxu1  ;;  %v2054_v33 = vpop.f32.mrb[3].mxu0 }
  0xfa   :  { %v2055_v34 = vadd.f32 %v2054_v33, %v2053_v30  ;;  %v2118_v35 = vpop.f32.mrb[3].mxu1  ;;  %v2451_v33 = vld [vmem:[%s3304_s1 + $0x1b0] sm:$0xff]  }
  0xfb   :  { %v2984_v36 = vadd.f32 %v2116_v31, %v2052_v28  ;;  %v2119_v37 = vadd.f32 %v2118_v35, %v2117_v32  ;;  %2311 = vmatprep.subr.bf16.mxu1 %v2451_v33 }
  0xfc   :  { %2312 = vmatpush3.bf16.msra.mxu1 %v2451_v33 }
  0xfd   :  { %v2986_v38 = vadd.f32 %v2119_v37, %v2055_v34 }
  0xfe   :  { %v2056_v39 = vpop.f32.mrb[4].mxu0 }
  0xff   :  { %v2120_v40 = vpop.f32.mrb[4].mxu1  ;;  %v2057_v41 = vpop.f32.mrb[5].mxu0 }
 0x100   :  { %v2058_v42 = vadd.f32 %v2057_v41, %v2056_v39  ;;  %v2121_v43 = vpop.f32.mrb[5].mxu1  ;;  %v2059_v44 = vpop.f32.mrb[6].mxu0 }
 0x101   :  { %v2122_v45 = vadd.f32 %v2121_v43, %v2120_v40  ;;  %v2123_v46 = vpop.f32.mrb[6].mxu1  ;;  %v2060_v47 = vpop.f32.mrb[7].mxu0  ;;  %v2452_v40 = vld [vmem:[%s3304_s1 + $0x1b8] sm:$0xff]  }
 0x102   :  { %v2061_v48 = vadd.f32 %v2060_v47, %v2059_v44  ;;  %v2124_v49 = vpop.f32.mrb[7].mxu1  ;;  %2313 = vmatprep.subr.bf16.mxu1 %v2452_v40 }
 0x103   :  { %v2988_v50 = vadd.f32 %v2122_v45, %v2058_v42  ;;  %v2125_v51 = vadd.f32 %v2124_v49, %v2123_v46  ;;  %2314 = vmatpush3.bf16.msra.mxu1 %v2452_v40 }
 0x105   :  { %v2990_v52 = vadd.f32 %v2125_v51, %v2061_v48 }
 0x106   :  { %v2062_v53 = vpop.f32.mrb[8].mxu0 }
 0x107   :  { %v2126_v54 = vpop.f32.mrb[8].mxu1  ;;  %v2063_v55 = vpop.f32.mrb[9].mxu0 }
 0x108   :  { %v2064_v56 = vadd.f32 %v2063_v55, %v2062_v53  ;;  %v2127_v57 = vpop.f32.mrb[9].mxu1  ;;  %v2065_v58 = vpop.f32.mrb[10].mxu0  ;;  %v2453_v53 = vld [vmem:[%s3304_s1 + $0x1c0] sm:$0xff]  }
 0x109   :  { %v2128_v59 = vadd.f32 %v2127_v57, %v2126_v54  ;;  %v2129_v60 = vpop.f32.mrb[10].mxu1  ;;  %v2066_v61 = vpop.f32.mrb[11].mxu0  ;;  %2315 = vmatprep.subr.bf16.mxu1 %v2453_v53 }
 0x10a   :  { %v2067_v62 = vadd.f32 %v2066_v61, %v2065_v58  ;;  %v2130_v63 = vpop.f32.mrb[11].mxu1  ;;  %2316 = vmatpush3.bf16.msra.mxu1 %v2453_v53 }
 0x10b   :  { %v2998_v2 = vadd.f32 %v2128_v59, %v2064_v56  ;;  %v2131_v3 = vadd.f32 %v2130_v63, %v2129_v60 }
 0x10d   :  { %v3000_v4 = vadd.f32 %v2131_v3, %v2067_v62 }
 0x10e   :  { %v2068_v5 = vpop.f32.mrb[12].mxu0 }
 0x10f   :  { %v2132_v7 = vpop.f32.mrb[12].mxu1  ;;  %v2069_v8 = vpop.f32.mrb[13].mxu0 }
 0x110   :  { %v2070_v9 = vadd.f32 %v2069_v8, %v2068_v5  ;;  %v2133_v10 = vpop.f32.mrb[13].mxu1  ;;  %v2071_v11 = vpop.f32.mrb[14].mxu0 }
 0x111   :  { %v2134_v12 = vadd.f32 %v2133_v10, %v2132_v7  ;;  %v2135_v13 = vpop.f32.mrb[14].mxu1  ;;  %v2072_v14 = vpop.f32.mrb[15].mxu0 }
 0x112   :  { %v2073_v15 = vadd.f32 %v2072_v14, %v2071_v11  ;;  %v2136_v16 = vpop.f32.mrb[15].mxu1 }
 0x113   :  { %v3008_v18 = vadd.f32 %v2134_v12, %v2070_v9  ;;  %v2137_v19 = vadd.f32 %v2136_v16, %v2135_v13 }
 0x115   :  { %v3010_v20 = vadd.f32 %v2137_v19, %v2073_v15 }
 0x116   :  { %v2074_v21 = vpop.f32.mrb[16].mxu0 }
 0x117   :  { %v2138_v23 = vpop.f32.mrb[16].mxu1  ;;  %v2075_v24 = vpop.f32.mrb[17].mxu0 }
 0x118   :  { %v2076_v25 = vadd.f32 %v2075_v24, %v2074_v21  ;;  %v2139_v26 = vpop.f32.mrb[17].mxu1  ;;  %v2077_v27 = vpop.f32.mrb[18].mxu0 }
 0x119   :  { %v2140_v28 = vadd.f32 %v2139_v26, %v2138_v23  ;;  %v2141_v29 = vpop.f32.mrb[18].mxu1  ;;  %v2078_v30 = vpop.f32.mrb[19].mxu0 }
 0x11a   :  { %v2079_v31 = vadd.f32 %v2078_v30, %v2077_v27  ;;  %v2142_v32 = vpop.f32.mrb[19].mxu1 }
 0x11b   :  { %v3018_v34 = vadd.f32 %v2140_v28, %v2076_v25  ;;  %v2143_v35 = vadd.f32 %v2142_v32, %v2141_v29 }
 0x11d   :  { %v3020_v37 = vadd.f32 %v2143_v35, %v2079_v31 }
 0x11e   :  { %v2080_v39 = vpop.f32.mrb[20].mxu0 }
 0x11f   :  { %v2144_v41 = vpop.f32.mrb[20].mxu1  ;;  %v2081_v42 = vpop.f32.mrb[21].mxu0 }
 0x120   :  { %v2082_v43 = vadd.f32 %v2081_v42, %v2080_v39  ;;  %v2145_v44 = vpop.f32.mrb[21].mxu1  ;;  %v2083_v45 = vpop.f32.mrb[22].mxu0 }
 0x121   :  { %v2146_v46 = vadd.f32 %v2145_v44, %v2144_v41  ;;  %v2147_v47 = vpop.f32.mrb[22].mxu1  ;;  %v2084_v48 = vpop.f32.mrb[23].mxu0 }
 0x122   :  { %v2085_v49 = vadd.f32 %v2084_v48, %v2083_v45  ;;  %v2148_v51 = vpop.f32.mrb[23].mxu1 }
 0x123   :  { %v3028_v54 = vadd.f32 %v2146_v46, %v2082_v43  ;;  %v2149_v55 = vadd.f32 %v2148_v51, %v2147_v47 }
 0x125   :  { %v3030_v56 = vadd.f32 %v2149_v55, %v2085_v49 }
 0x126   :  { %v2086_v57 = vpop.f32.mrb[24].mxu0 }
 0x127   :  { %v2150_v58 = vpop.f32.mrb[24].mxu1  ;;  %v2087_v59 = vpop.f32.mrb[25].mxu0 }
 0x128   :  { %v2088_v60 = vadd.f32 %v2087_v59, %v2086_v57  ;;  %v2151_v61 = vpop.f32.mrb[25].mxu1  ;;  %v2089_v62 = vpop.f32.mrb[26].mxu0 }
 0x129   :  { %v2152_v63 = vadd.f32 %v2151_v61, %v2150_v58  ;;  %v2153_v0 = vpop.f32.mrb[26].mxu1  ;;  %v2090_v1 = vpop.f32.mrb[27].mxu0 }
 0x12a   :  { %v2091_v3 = vadd.f32 %v2090_v1, %v2089_v62  ;;  %v2154_v5 = vpop.f32.mrb[27].mxu1 }
 0x12b   :  { %v3032_v6 = vadd.f32 %v2152_v63, %v2088_v60  ;;  %v2155_v7 = vadd.f32 %v2154_v5, %v2153_v0 }
 0x12d   :  { %v3034_v8 = vadd.f32 %v2155_v7, %v2091_v3 }
 0x12e   :  { %v2092_v9 = vpop.f32.mrb[28].mxu0 }
 0x12f   :  { %v2156_v10 = vpop.f32.mrb[28].mxu1  ;;  %v2093_v11 = vpop.f32.mrb[29].mxu0 }
 0x130   :  { %v2094_v12 = vadd.f32 %v2093_v11, %v2092_v9  ;;  %v2157_v13 = vpop.f32.mrb[29].mxu1  ;;  %v2095_v14 = vpop.f32.mrb[30].mxu0 }
 0x131   :  { %v2158_v15 = vadd.f32 %v2157_v13, %v2156_v10  ;;  %v2159_v16 = vpop.f32.mrb[30].mxu1  ;;  %v2096_v17 = vpop.f32.mrb[31].mxu0 }
 0x132   :  { %v2097_v19 = vadd.f32 %v2096_v17, %v2095_v14  ;;  %v2160_v21 = vpop.f32.mrb[31].mxu1 }
 0x133   :  { %v3036_v22 = vadd.f32 %v2158_v15, %v2094_v12  ;;  %v2161_v23 = vadd.f32 %v2160_v21, %v2159_v16 }
 0x135   :  { %v3038_v24 = vadd.f32 %v2161_v23, %v2097_v19 }
 0x136   :  { %v2178_v25 = vpop.f32.mrb[32].mxu0 }
 0x137   :  { %v2179_v26 = vpop.f32.mrb[33].mxu0  ;;  %v2287_v27 = vpop.f32.mrb[32].mxu1 }
 0x138   :  { %v2180_v28 = vadd.f32 %v2179_v26, %v2178_v25  ;;  %v2181_v29 = vpop.f32.mrb[34].mxu0  ;;  %v922_v30 = vpop.f32.mrb[33].mxu1 }
 0x139   :  { %v2182_v31 = vpop.f32.mrb[35].mxu0  ;;  %v2288_v32 = vpop.f32.mrb[34].mxu1 }
 0x13a   :  { %v2183_v33 = vadd.f32 %v2182_v31, %v2181_v29  ;;  %v826_v35 = vadd.f32 %v2180_v28, %v2984_v36  ;;  %v925_v39 = vpop.f32.mrb[35].mxu1 }
 0x13c   :  { %v3041_v40 = vadd.f32 %v922_v30, %v826_v35  ;;  %v829_v41 = vadd.f32 %v2183_v33, %v2986_v38 }
 0x13e   :  { %v3044_v42 = vadd.f32 %v925_v39, %v829_v41  ;;  %v2184_v43 = vpop.f32.mrb[36].mxu0 }
 0x13f   :  { %v2185_v44 = vpop.f32.mrb[37].mxu0  ;;  %v2291_v45 = vpop.f32.mrb[36].mxu1 }
 0x140   :  { %v985_v46 = vadd.f32 %v3044_v42, %v3041_v40  ;;  %v2186_v47 = vadd.f32 %v2185_v44, %v2184_v43  ;;  %v2187_v48 = vpop.f32.mrb[38].mxu0  ;;  %v938_v49 = vpop.f32.mrb[37].mxu1 }
 0x141   :  { %v2188_v51 = vpop.f32.mrb[39].mxu0  ;;  %v2292_v53 = vpop.f32.mrb[38].mxu1 }
 0x142   :  { %v834_v36 = vadd.f32 %v2186_v47, %v2988_v50  ;;  %v2189_v55 = vadd.f32 %v2188_v51, %v2187_v48  ;;  %v941_v57 = vpop.f32.mrb[39].mxu1 }
 0x144   :  { %v3049_v58 = vadd.f32 %v2287_v27, %v834_v36  ;;  %v837_v38 = vadd.f32 %v2189_v55, %v2990_v52 }
 0x146   :  { %v3052_v59 = vadd.f32 %v2288_v32, %v837_v38  ;;  %v2190_v60 = vpop.f32.mrb[40].mxu0  ;;  %v986_v61 = vadd.f32 %v985_v46, %v3049_v58 }
 0x147   :  { %v2191_v62 = vpop.f32.mrb[41].mxu0  ;;  %v2295_v63 = vpop.f32.mrb[40].mxu1 }
 0x148   :  { %v2192_v0 = vadd.f32 %v2191_v62, %v2190_v60  ;;  %v2193_v1 = vpop.f32.mrb[42].mxu0  ;;  %v987_v3 = vadd.f32 %v986_v61, %v3052_v59  ;;  %v954_v5 = vpop.f32.mrb[41].mxu1 }
 0x149   :  { %v2194_v7 = vpop.f32.mrb[43].mxu0  ;;  %v2296_v50 = vpop.f32.mrb[42].mxu1 }
 0x14a   :  { %v2195_v9 = vadd.f32 %v2194_v7, %v2193_v1  ;;  %v842_v10 = vadd.f32 %v2192_v0, %v2998_v2  ;;  %v957_v11 = vpop.f32.mrb[43].mxu1 }
 0x14c   :  { %v3057_v12 = vadd.f32 %v938_v49, %v842_v10  ;;  %v845_v52 = vadd.f32 %v2195_v9, %v3000_v4 }
 0x14e   :  { %v988_v13 = vadd.f32 %v987_v3, %v3057_v12  ;;  %v3061_v14 = vadd.f32 %v941_v57, %v845_v52  ;;  %v2196_v15 = vpop.f32.mrb[44].mxu0 }
 0x14f   :  { %v2197_v16 = vpop.f32.mrb[45].mxu0  ;;  %v2299_v17 = vpop.f32.mrb[44].mxu1 }
 0x150   :  { %v989_v19 = vadd.f32 %v988_v13, %v3061_v14  ;;  %v2198_v21 = vadd.f32 %v2197_v16, %v2196_v15  ;;  %v2199_v23 = vpop.f32.mrb[46].mxu0  ;;  %v970_v25 = vpop.f32.mrb[45].mxu1 }
 0x151   :  { %v2200_v26 = vpop.f32.mrb[47].mxu0  ;;  %v2300_v27 = vpop.f32.mrb[46].mxu1 }
 0x152   :  { %v850_v2 = vadd.f32 %v2198_v21, %v3008_v18  ;;  %v2201_v28 = vadd.f32 %v2200_v26, %v2199_v23  ;;  %v973_v29 = vpop.f32.mrb[47].mxu1 }
 0x154   :  { %v3065_v30 = vadd.f32 %v2291_v45, %v850_v2  ;;  %v853_v4 = vadd.f32 %v2201_v28, %v3010_v20 }
 0x156   :  { %v3068_v31 = vadd.f32 %v2292_v53, %v853_v4  ;;  %v2202_v32 = vpop.f32.mrb[48].mxu0  ;;  %v990_v33 = vadd.f32 %v989_v19, %v3065_v30 }
 0x157   :  { %v2203_v35 = vpop.f32.mrb[49].mxu0 }
 0x158   :  { %v2204_v39 = vadd.f32 %v2203_v35, %v2202_v32  ;;  %v2205_v41 = vpop.f32.mrb[50].mxu0  ;;  %v991_v43 = vadd.f32 %v990_v33, %v3068_v31 }
 0x159   :  { %v2206_v44 = vpop.f32.mrb[51].mxu0 }
 0x15a   :  { %v2207_v46 = vadd.f32 %v2206_v44, %v2205_v41  ;;  %v858_v18 = vadd.f32 %v2204_v39, %v3018_v34 }
 0x15c   :  { %v955_v47 = vadd.f32 %v954_v5, %v858_v18  ;;  %v861_v45 = vadd.f32 %v2207_v46, %v3020_v37 }
 0x15e   :  { %v992_v48 = vadd.f32 %v991_v43, %v955_v47  ;;  %v958_v49 = vadd.f32 %v957_v11, %v861_v45  ;;  %v2208_v20 = vpop.f32.mrb[52].mxu0 }
 0x15f   :  { %v2209_v51 = vpop.f32.mrb[53].mxu0 }
 0x160   :  { %v993_v53 = vadd.f32 %v992_v48, %v958_v49  ;;  %v2210_v36 = vadd.f32 %v2209_v51, %v2208_v20  ;;  %v2211_v55 = vpop.f32.mrb[54].mxu0 }
 0x161   :  { %v2212_v57 = vpop.f32.mrb[55].mxu0 }
 0x162   :  { %v866_v38 = vadd.f32 %v2210_v36, %v3028_v54  ;;  %v2213_v60 = vadd.f32 %v2212_v57, %v2211_v55 }
 0x164   :  { %v963_v61 = vadd.f32 %v2295_v63, %v866_v38  ;;  %v869_v62 = vadd.f32 %v2213_v60, %v3030_v56 }
 0x166   :  { %v966_v0 = vadd.f32 %v2296_v50, %v869_v62  ;;  %v2214_v1 = vpop.f32.mrb[56].mxu0  ;;  %v994_v34 = vadd.f32 %v993_v53, %v963_v61 }
 0x167   :  { %v2215_v3 = vpop.f32.mrb[57].mxu0 }
 0x168   :  { %v2216_v5 = vadd.f32 %v2215_v3, %v2214_v1  ;;  %v2217_v37 = vpop.f32.mrb[58].mxu0  ;;  %v995_v7 = vadd.f32 %v994_v34, %v966_v0 }
 0x169   :  { %v2218_v9 = vpop.f32.mrb[59].mxu0 }
 0x16a   :  { %v2219_v10 = vadd.f32 %v2218_v9, %v2217_v37  ;;  %v874_v11 = vadd.f32 %v2216_v5, %v3032_v6 }
 0x16c   :  { %v971_v52 = vadd.f32 %v970_v25, %v874_v11  ;;  %v877_v13 = vadd.f32 %v2219_v10, %v3034_v8 }
 0x16e   :  { %v996_v15 = vadd.f32 %v995_v7, %v971_v52  ;;  %v974_v54 = vadd.f32 %v973_v29, %v877_v13  ;;  %v2220_v16 = vpop.f32.mrb[60].mxu0 }
 0x16f   :  { %v2221_v63 = vpop.f32.mrb[61].mxu0 }
 0x170   :  { %v997_v19 = vadd.f32 %v996_v15, %v974_v54  ;;  %v2222_v56 = vadd.f32 %v2221_v63, %v2220_v16  ;;  %v2223_v50 = vpop.f32.mrb[62].mxu0 }
 0x171   :  { %v2224_v21 = vpop.f32.mrb[63].mxu0 }
 0x172   :  { %v882_v23 = vadd.f32 %v2222_v56, %v3036_v22  ;;  %v2225_v26 = vadd.f32 %v2224_v21, %v2223_v50 }
 0x174   :  { %v979_v2 = vadd.f32 %v2299_v17, %v882_v23  ;;  %v885_v28 = vadd.f32 %v2225_v26, %v3038_v24 }
 0x176   :  { %v998_v4 = vadd.f32 %v997_v19, %v979_v2  ;;  %v982_v32 = vadd.f32 %v2300_v27, %v885_v28 }
 0x178   :  { %v999_v6 = vadd.f32 %v998_v4, %v982_v32 }
 0x17a   :  { %v1000_v25 = vrot.slane %v999_v6, 4 }
 0x17c   :  { %v1001_v33 = vadd.f32 %v1000_v25, %v999_v6 }
 0x17e   :  { %v1002_v8 = vrot.slane %v1001_v33, 2 }
 0x180   :  { %v1003_v35 = vadd.f32 %v1002_v8, %v1001_v33 }
 0x182   :  { %v1004_v29 = vrot.slane %v1003_v35, 1 }
 0x184   :  { %v1005_v39 = vadd.f32 %v1004_v29, %v1003_v35 }
 0x186   :  { %v1007_v41 = vmul.f32 0.0078125, %v1005_v39 }
 0x188   :  { %v3080_v43 = vsub.f32 %v982_v32, %v1007_v41  ;;  %v1008_v44 = vsub.f32 %v3041_v40, %v1007_v41  ;;  %v1009_v22 = vsub.f32 %v3044_v42, %v1007_v41  ;;  %v1010_v17 = vsub.f32 %v3049_v58, %v1007_v41 }
 0x189   :  { %v1011_v24 = vsub.f32 %v3052_v59, %v1007_v41  ;;  %v1012_v27 = vsub.f32 %v3057_v12, %v1007_v41  ;;  %v1013_v46 = vsub.f32 %v3061_v14, %v1007_v41  ;;  %v1014_v18 = vsub.f32 %v3065_v30, %v1007_v41 }
 0x18a   :  { %v1015_v45 = vsub.f32 %v3068_v31, %v1007_v41  ;;  %v3090_v48 = vsub.f32 %v955_v47, %v1007_v41  ;;  %v3092_v20 = vsub.f32 %v958_v49, %v1007_v41  ;;  %v3094_v51 = vsub.f32 %v963_v61, %v1007_v41 }
 0x18b   :  { %v3096_v40 = vsub.f32 %v966_v0, %v1007_v41  ;;  %v3098_v42 = vsub.f32 %v971_v52, %v1007_v41  ;;  %v3100_v58 = vsub.f32 %v974_v54, %v1007_v41  ;;  %v3102_v59 = vsub.f32 %v979_v2, %v1007_v41 }
 0x18c   :  { %v1024_v12 = vmul.f32 %v1008_v44, %v1008_v44  ;;  %v1025_v14 = vmul.f32 %v1009_v22, %v1009_v22  ;;  %v1026_v53 = vmul.f32 %v1010_v17, %v1010_v17  ;;  %v1027_v36 = vmul.f32 %v1011_v24, %v1011_v24 }
 0x18d   :  { %v1028_v47 = vmul.f32 %v1012_v27, %v1012_v27  ;;  %v1029_v49 = vmul.f32 %v1013_v46, %v1013_v46  ;;  %v1030_v38 = vmul.f32 %v1014_v18, %v1014_v18  ;;  %v1031_v61 = vmul.f32 %v1015_v45, %v1015_v45 }
 0x18e   :  { %v1040_v30 = vadd.f32 %v1025_v14, %v1024_v12  ;;  %v1032_v0 = vmul.f32 %v3090_v48, %v3090_v48  ;;  %v1033_v34 = vmul.f32 %v3092_v20, %v3092_v20  ;;  %v1034_v5 = vmul.f32 %v3094_v51, %v3094_v51 }
 0x18f   :  { %v1035_v7 = vmul.f32 %v3096_v40, %v3096_v40  ;;  %v1036_v10 = vmul.f32 %v3098_v42, %v3098_v42  ;;  %v1037_v52 = vmul.f32 %v3100_v58, %v3100_v58  ;;  %v1038_v15 = vmul.f32 %v3102_v59, %v3102_v59 }
 0x190   :  { %v1041_v31 = vadd.f32 %v1040_v30, %v1026_v53  ;;  %v1039_v16 = vmul.f32 %v3080_v43, %v3080_v43 }
 0x192   :  { %v1042_v55 = vadd.f32 %v1041_v31, %v1027_v36 }
 0x194   :  { %v1043_v57 = vadd.f32 %v1042_v55, %v1028_v47 }
 0x196   :  { %v1044_v60 = vadd.f32 %v1043_v57, %v1029_v49 }
 0x198   :  { %v1045_v62 = vadd.f32 %v1044_v60, %v1030_v38 }
 0x19a   :  { %v1046_v1 = vadd.f32 %v1045_v62, %v1031_v61 }
 0x19c   :  { %v1047_v3 = vadd.f32 %v1046_v1, %v1032_v0 }
 0x19e   :  { %v1048_v37 = vadd.f32 %v1047_v3, %v1033_v34 }
 0x1a0   :  { %v1049_v9 = vadd.f32 %v1048_v37, %v1034_v5 }
 0x1a2   :  { %v1050_v11 = vadd.f32 %v1049_v9, %v1035_v7  ;;  %v2458_v7 = vld [vmem:[%s3304_s1 + $0x1e8] sm:$0xff]   ;;  %v2459_v9 = vld [vmem:[%s3304_s1 + $0x1f0] sm:$0xff]  }
 0x1a4   :  { %v1051_v13 = vadd.f32 %v1050_v11, %v1036_v10  ;;  %v2460_v10 = vld [vmem:[%s3304_s1 + $0x1f8] sm:$0xff]   ;;  %v2461_v11 = vld [vmem:[%s3304_s1 + $0x200] sm:$0xff]  }
 0x1a6   :  { %v1052_v54 = vadd.f32 %v1051_v13, %v1037_v52 }
 0x1a8   :  { %v1053_v63 = vadd.f32 %v1052_v54, %v1038_v15 }
 0x1aa   :  { %v1054_v19 = vadd.f32 %v1053_v63, %v1039_v16 }
 0x1ac   :  { %v1055_v56 = vrot.slane %v1054_v19, 4 }
 0x1ae   :  { %v1056_v50 = vadd.f32 %v1055_v56, %v1054_v19 }
 0x1b0   :  { %v1057_v21 = vrot.slane %v1056_v50, 2 }
 0x1b2   :  { %v1058_v23 = vadd.f32 %v1057_v21, %v1056_v50 }
 0x1b4   :  { %v1059_v26 = vrot.slane %v1058_v23, 1 }
 0x1b6   :  { %v1060_v2 = vadd.f32 %v1059_v26, %v1058_v23 }
 0x1b8   :  { %v1061_v28 = vmul.f32 0.0078125, %v1060_v2 }
 0x1ba   :  { %v1062_v4 = vadd.f32 1e-05, %v1061_v28 }
 0x1bc   :  { %2470 = vrsqrt.f32 %v1062_v4 }
 0x1c6   :  { %v2471_v32 = vpop.eup %2470 }
 0x1c7   :  { %v1064_v6 = vmul.f32 %v2471_v32, %v1008_v44  ;;  %v1065_v25 = vmul.f32 %v2471_v32, %v1009_v22  ;;  %v1066_v33 = vmul.f32 %v2471_v32, %v1010_v17  ;;  %v1067_v8 = vmul.f32 %v2471_v32, %v1011_v24 }
 0x1c8   :  { %v1068_v35 = vmul.f32 %v2471_v32, %v1012_v27  ;;  %v1069_v29 = vmul.f32 %v2471_v32, %v1013_v46  ;;  %v1070_v39 = vmul.f32 %v2471_v32, %v1014_v18  ;;  %v1071_v41 = vmul.f32 %v2471_v32, %v1015_v45 }
 0x1c9   :  { %v1080_v12 = vmax.f32 %v1064_v6, 0.0  ;;  %v1081_v14 = vmax.f32 %v1065_v25, 0.0  ;;  %v1082_v53 = vmax.f32 %v1066_v33, 0.0  ;;  %v1083_v30 = vmax.f32 %v1067_v8, 0.0 }
 0x1ca   :  { %v1084_v36 = vmax.f32 %v1068_v35, 0.0  ;;  %v1085_v31 = vmax.f32 %v1069_v29, 0.0  ;;  %v1086_v47 = vmax.f32 %v1070_v39, 0.0  ;;  %v1087_v55 = vmax.f32 %v1071_v41, 0.0 }
 0x1cb   :  { %v1096_v49 = vpack.c.bf16 %v1081_v14, %v1080_v12  ;;  %v1097_v57 = vpack.c.bf16 %v1083_v30, %v1082_v53  ;;  %v1072_v38 = vmul.f32 %v2471_v32, %v3090_v48  ;;  %v1073_v44 = vmul.f32 %v2471_v32, %v3092_v20 }
 0x1cc   :  { %v1098_v22 = vpack.c.bf16 %v1085_v31, %v1084_v36  ;;  %v1099_v17 = vpack.c.bf16 %v1087_v55, %v1086_v47  ;;  %v1074_v24 = vmul.f32 %v2471_v32, %v3094_v51  ;;  %v1075_v27 = vmul.f32 %v2471_v32, %v3096_v40 }
 0x1cd   :  { %2317 = vmatprep.mubr.bf16.mxu1 %v1096_v49  ;;  %v1088_v46 = vmax.f32 %v1072_v38, 0.0  ;;  %v1089_v18 = vmax.f32 %v1073_v44, 0.0  ;;  %v1076_v45 = vmul.f32 %v2471_v32, %v3098_v42  ;;  %v1077_v60 = vmul.f32 %v2471_v32, %v3100_v58  ;;  %v2454_v42 = vld [vmem:[%s3304_s1 + $0x1c8] sm:$0xff]   ;;  %v2456_v58 = vld [vmem:[%s3304_s1 + $0x1d8] sm:$0xff]  }
 0x1ce   :  { %2318 = vmatmul.mubr.bf16.vlgmr.msra.gmra.mrb[48].mxu1 %v1097_v57  ;;  %v1090_v61 = vmax.f32 %v1074_v24, 0.0  ;;  %v1091_v62 = vmax.f32 %v1075_v27, 0.0  ;;  %v1078_v48 = vmul.f32 %v2471_v32, %v3102_v59  ;;  %v1079_v20 = vmul.f32 %v2471_v32, %v3080_v43  ;;  %2333 = vmatprep.subr.bf16.mxu0 %v2454_v42  ;;  %v2455_v43 = vld [vmem:[%s3304_s1 + $0x1d0] sm:$0xff]   ;;  %v2457_v59 = vld [vmem:[%s3304_s1 + $0x1e0] sm:$0xff]  }
 0x1cf   :  { %2321 = vmatprep.mubr.bf16.mxu1 %v1098_v22  ;;  %v1100_v0 = vpack.c.bf16 %v1089_v18, %v1088_v46  ;;  %v1092_v1 = vmax.f32 %v1076_v45, 0.0  ;;  %v1093_v51 = vmax.f32 %v1077_v60, 0.0  ;;  %2334 = vmatpush3.bf16.msra.mxu0 %v2454_v42 }
 0x1d0   :  { %v1101_v34 = vpack.c.bf16 %v1091_v62, %v1090_v61  ;;  %v1094_v40 = vmax.f32 %v1078_v48, 0.0  ;;  %v1095_v3 = vmax.f32 %v1079_v20, 0.0  ;;  %2335 = vmatprep.subr.bf16.mxu0 %v2455_v43 }
 0x1d1   :  { %v1102_v5 = vpack.c.bf16 %v1093_v51, %v1092_v1 }
 0x1d2   :  { %v1103_v37 = vpack.c.bf16 %v1095_v3, %v1094_v40 }
 0x1d3   :  { %2336 = vmatpush3.bf16.msra.mxu0 %v2455_v43 }
 0x1d4   :  { %2337 = vmatprep.subr.bf16.mxu0 %v2456_v58 }
 0x1d6   :  { %2322 = vmatmul.mubr.bf16.gmra.mrb[52].mxu1 %v1099_v17 }
 0x1d7   :  { %2325 = vmatprep.mubr.bf16.mxu1 %v1100_v0  ;;  %2338 = vmatpush3.bf16.msra.mxu0 %v2456_v58 }
 0x1d8   :  { %2339 = vmatprep.subr.bf16.mxu0 %v2457_v59 }
 0x1db   :  { %2340 = vmatpush3.bf16.msra.mxu0 %v2457_v59 }
 0x1dc   :  { %2341 = vmatprep.subr.bf16.mxu0 %v2458_v7 }
 0x1de   :  { %2326 = vmatmul.mubr.bf16.gmra.mrb[56].mxu1 %v1101_v34 }
 0x1df   :  { %2329 = vmatprep.mubr.bf16.mxu1 %v1102_v5  ;;  %2342 = vmatpush3.bf16.msra.mxu0 %v2458_v7 }
 0x1e0   :  { %2343 = vmatprep.subr.bf16.mxu0 %v2459_v9 }
 0x1e3   :  { %2344 = vmatpush3.bf16.msra.mxu0 %v2459_v9 }
 0x1e4   :  { %2345 = vmatprep.subr.bf16.mxu0 %v2460_v10 }
 0x1e6   :  { %2330 = vmatmul.mubr.bf16.gmra.mrb[60].mxu1 %v1103_v37 }
 0x1e7   :  { %2346 = vmatpush3.bf16.msra.mxu0 %v2460_v10 }
 0x1e8   :  { %2347 = vmatprep.subr.bf16.mxu0 %v2461_v11 }
 0x1eb   :  { %2348 = vmatpush3.bf16.msra.mxu0 %v2461_v11 }
 0x2a1   :  { %v2319_v52 = vpop.f32.mrb[48].mxu1 }
 0x2a2   :  { %v1202_v13 = vpop.f32.mrb[49].mxu1 }
 0x2a3   :  { %v2320_v15 = vpop.f32.mrb[50].mxu1 }
 0x2a4   :  { %v1205_v54 = vpop.f32.mrb[51].mxu1 }
 0x2a5   :  { %v1265_v16 = vadd.f32 %v1205_v54, %v1202_v13 }
 0x2a7   :  { %v1266_v63 = vadd.f32 %v2319_v52, %v1265_v16 }
 0x2a9   :  { %v2323_v19 = vpop.f32.mrb[52].mxu1  ;;  %v1267_v56 = vadd.f32 %v2320_v15, %v1266_v63 }
 0x2aa   :  { %v1218_v50 = vpop.f32.mrb[53].mxu1 }
 0x2ab   :  { %v1268_v21 = vadd.f32 %v1267_v56, %v1218_v50  ;;  %v2324_v23 = vpop.f32.mrb[54].mxu1 }
 0x2ac   :  { %v1221_v26 = vpop.f32.mrb[55].mxu1 }
 0x2ad   :  { %v1269_v2 = vadd.f32 %v1268_v21, %v1221_v26 }
 0x2af   :  { %v1270_v28 = vadd.f32 %v2323_v19, %v1269_v2 }
 0x2b1   :  { %v2327_v4 = vpop.f32.mrb[56].mxu1  ;;  %v1271_v32 = vadd.f32 %v2324_v23, %v1270_v28 }
 0x2b2   :  { %v1234_v6 = vpop.f32.mrb[57].mxu1 }
 0x2b3   :  { %v1272_v25 = vadd.f32 %v1271_v32, %v1234_v6  ;;  %v2328_v33 = vpop.f32.mrb[58].mxu1 }
 0x2b4   :  { %v1237_v8 = vpop.f32.mrb[59].mxu1 }
 0x2b5   :  { %v1273_v35 = vadd.f32 %v1272_v25, %v1237_v8 }
 0x2b7   :  { %v1274_v29 = vadd.f32 %v2327_v4, %v1273_v35 }
 0x2b9   :  { %v2331_v39 = vpop.f32.mrb[60].mxu1  ;;  %v1275_v41 = vadd.f32 %v2328_v33, %v1274_v29 }
 0x2ba   :  { %v1250_v12 = vpop.f32.mrb[61].mxu1 }
 0x2bb   :  { %v1276_v14 = vadd.f32 %v1275_v41, %v1250_v12  ;;  %v2332_v53 = vpop.f32.mrb[62].mxu1 }
 0x2bc   :  { %v1253_v30 = vpop.f32.mrb[63].mxu1 }
 0x2bd   :  { %v1277_v36 = vadd.f32 %v1276_v14, %v1253_v30 }
 0x2bf   :  { %v1278_v31 = vadd.f32 %v2331_v39, %v1277_v36 }
 0x2c1   :  { %v1279_v47 = vadd.f32 %v2332_v53, %v1278_v31 }
 0x2c3   :  { %v1280_v55 = vrot.slane %v1279_v47, 4 }
 0x2c5   :  { %v1281_v49 = vadd.f32 %v1280_v55, %v1279_v47 }
 0x2c7   :  { %v1282_v57 = vrot.slane %v1281_v49, 2 }
 0x2c9   :  { %v1283_v38 = vadd.f32 %v1282_v57, %v1281_v49 }
 0x2cb   :  { %v1284_v44 = vrot.slane %v1283_v38, 1 }
 0x2cd   :  { %v1285_v22 = vadd.f32 %v1284_v44, %v1283_v38 }
 0x2cf   :  { %v1286_v17 = vmul.f32 0.0078125, %v1285_v22 }
 0x2d1   :  { %v1287_v24 = vsub.f32 %v1202_v13, %v1286_v17  ;;  %v1288_v27 = vsub.f32 %v1205_v54, %v1286_v17  ;;  %v1289_v46 = vsub.f32 %v2319_v52, %v1286_v17  ;;  %v1290_v18 = vsub.f32 %v2320_v15, %v1286_v17 }
 0x2d2   :  { %v1291_v45 = vsub.f32 %v1218_v50, %v1286_v17  ;;  %v1292_v60 = vsub.f32 %v1221_v26, %v1286_v17  ;;  %v1293_v61 = vsub.f32 %v2323_v19, %v1286_v17  ;;  %v3152_v62 = vsub.f32 %v2324_v23, %v1286_v17 }
 0x2d3   :  { %v3154_v48 = vsub.f32 %v1234_v6, %v1286_v17  ;;  %v3156_v20 = vsub.f32 %v1237_v8, %v1286_v17  ;;  %v3158_v0 = vsub.f32 %v2327_v4, %v1286_v17  ;;  %v3160_v1 = vsub.f32 %v2328_v33, %v1286_v17 }
 0x2d4   :  { %v3162_v51 = vsub.f32 %v1250_v12, %v1286_v17  ;;  %v1300_v34 = vsub.f32 %v1253_v30, %v1286_v17  ;;  %v3164_v40 = vsub.f32 %v2331_v39, %v1286_v17  ;;  %v3166_v3 = vsub.f32 %v2332_v53, %v1286_v17 }
 0x2d5   :  { %v1303_v5 = vmul.f32 %v1287_v24, %v1287_v24  ;;  %v1304_v37 = vmul.f32 %v1288_v27, %v1288_v27  ;;  %v1305_v42 = vmul.f32 %v1289_v46, %v1289_v46  ;;  %v1306_v58 = vmul.f32 %v1290_v18, %v1290_v18 }
 0x2d6   :  { %v1307_v7 = vmul.f32 %v1291_v45, %v1291_v45  ;;  %v1308_v10 = vmul.f32 %v1292_v60, %v1292_v60  ;;  %v1309_v52 = vmul.f32 %v1293_v61, %v1293_v61  ;;  %v1310_v15 = vmul.f32 %v3152_v62, %v3152_v62 }
 0x2d7   :  { %v1319_v43 = vadd.f32 %v1304_v37, %v1303_v5  ;;  %v1311_v16 = vmul.f32 %v3154_v48, %v3154_v48  ;;  %v1312_v19 = vmul.f32 %v3156_v20, %v3156_v20  ;;  %v1313_v50 = vmul.f32 %v3158_v0, %v3158_v0 }
 0x2d8   :  { %v1314_v23 = vmul.f32 %v3160_v1, %v3160_v1  ;;  %v1315_v2 = vmul.f32 %v3162_v51, %v3162_v51  ;;  %v1316_v4 = vmul.f32 %v1300_v34, %v1300_v34  ;;  %v1317_v6 = vmul.f32 %v3164_v40, %v3164_v40 }
 0x2d9   :  { %v1320_v59 = vadd.f32 %v1319_v43, %v1305_v42  ;;  %v1318_v33 = vmul.f32 %v3166_v3, %v3166_v3 }
 0x2db   :  { %v1321_v9 = vadd.f32 %v1320_v59, %v1306_v58 }
 0x2dd   :  { %v1322_v11 = vadd.f32 %v1321_v9, %v1307_v7 }
 0x2df   :  { %v1323_v13 = vadd.f32 %v1322_v11, %v1308_v10 }
 0x2e1   :  { %v1324_v54 = vadd.f32 %v1323_v13, %v1309_v52 }
 0x2e3   :  { %v1325_v63 = vadd.f32 %v1324_v54, %v1310_v15 }
 0x2e5   :  { %v1326_v56 = vadd.f32 %v1325_v63, %v1311_v16 }
 0x2e7   :  { %v1327_v21 = vadd.f32 %v1326_v56, %v1312_v19 }
 0x2e9   :  { %v1328_v26 = vadd.f32 %v1327_v21, %v1313_v50 }
 0x2eb   :  { %v1329_v28 = vadd.f32 %v1328_v26, %v1314_v23  ;;  %v2466_v23 = vld [vmem:[%s3304_s1 + $0x228] sm:$0xff]   ;;  %v2467_v26 = vld [vmem:[%s3304_s1 + $0x230] sm:$0xff]  }
 0x2ed   :  { %v1330_v32 = vadd.f32 %v1329_v28, %v1315_v2  ;;  %v2468_v2 = vld [vmem:[%s3304_s1 + $0x238] sm:$0xff]   ;;  %v2469_v28 = vld [vmem:[%s3304_s1 + $0x240] sm:$0xff]  }
 0x2ef   :  { %v1331_v25 = vadd.f32 %v1330_v32, %v1316_v4 }
 0x2f1   :  { %v1332_v8 = vadd.f32 %v1331_v25, %v1317_v6 }
 0x2f3   :  { %v1333_v35 = vadd.f32 %v1332_v8, %v1318_v33 }
 0x2f5   :  { %v1334_v29 = vrot.slane %v1333_v35, 4 }
 0x2f7   :  { %v1335_v39 = vadd.f32 %v1334_v29, %v1333_v35 }
 0x2f9   :  { %v1336_v41 = vrot.slane %v1335_v39, 2 }
 0x2fb   :  { %v1337_v12 = vadd.f32 %v1336_v41, %v1335_v39 }
 0x2fd   :  { %v1338_v14 = vrot.slane %v1337_v12, 1 }
 0x2ff   :  { %v1339_v53 = vadd.f32 %v1338_v14, %v1337_v12 }
 0x301   :  { %v1340_v30 = vmul.f32 0.0078125, %v1339_v53 }
 0x303   :  { %v1341_v36 = vadd.f32 1e-05, %v1340_v30 }
 0x305   :  { %2472 = vrsqrt.f32 %v1341_v36 }
 0x30f   :  { %v2473_v31 = vpop.eup %2472 }
 0x310   :  { %v1356_v47 = vmul.f32 %v2473_v31, %v1300_v34  ;;  %v1343_v55 = vmul.f32 %v2473_v31, %v1287_v24  ;;  %v1344_v49 = vmul.f32 %v2473_v31, %v1288_v27  ;;  %v1345_v57 = vmul.f32 %v2473_v31, %v1289_v46 }
 0x311   :  { %v1346_v38 = vmul.f32 %v2473_v31, %v1290_v18  ;;  %v1347_v44 = vmul.f32 %v2473_v31, %v1291_v45  ;;  %v1348_v22 = vmul.f32 %v2473_v31, %v1292_v60  ;;  %v1349_v17 = vmul.f32 %v2473_v31, %v1293_v61 }
 0x312   :  { %v1372_v5 = vmax.f32 %v1356_v47, 0.0  ;;  %v1359_v37 = vmax.f32 %v1343_v55, 0.0  ;;  %v1360_v42 = vmax.f32 %v1344_v49, 0.0  ;;  %v1361_v43 = vmax.f32 %v1345_v57, 0.0 }
 0x313   :  { %v1362_v58 = vmax.f32 %v1346_v38, 0.0  ;;  %v1363_v59 = vmax.f32 %v1347_v44, 0.0  ;;  %v1364_v7 = vmax.f32 %v1348_v22, 0.0  ;;  %v1350_v9 = vmul.f32 %v2473_v31, %v3152_v62 }
 0x314   :  { %v1375_v10 = vpack.c.bf16 %v1360_v42, %v1359_v37  ;;  %v1365_v11 = vmax.f32 %v1349_v17, 0.0  ;;  %v1351_v34 = vmul.f32 %v2473_v31, %v3154_v48  ;;  %v1352_v24 = vmul.f32 %v2473_v31, %v3156_v20 }
 0x315   :  { %v1376_v27 = vpack.c.bf16 %v1362_v58, %v1361_v43  ;;  %v1377_v46 = vpack.c.bf16 %v1364_v7, %v1363_v59  ;;  %v1366_v18 = vmax.f32 %v1350_v9, 0.0  ;;  %v1353_v45 = vmul.f32 %v2473_v31, %v3158_v0 }
 0x316   :  { %2349 = vmatprep.mubr.bf16.mxu0 %v1375_v10  ;;  %v1367_v60 = vmax.f32 %v1351_v34, 0.0  ;;  %v1368_v61 = vmax.f32 %v1352_v24, 0.0  ;;  %v1354_v52 = vmul.f32 %v2473_v31, %v3160_v1  ;;  %v1355_v13 = vmul.f32 %v2473_v31, %v3162_v51  ;;  %v2462_v1 = vld [vmem:[%s3304_s1 + $0x208] sm:$0xff]   ;;  %v2463_v51 = vld [vmem:[%s3304_s1 + $0x210] sm:$0xff]  }
 0x317   :  { %2350 = vmatmul.mubr.bf16.vlgmr.msra.gmra.mrb[64].mxu0 %v1376_v27  ;;  %v1378_v62 = vpack.c.bf16 %v1366_v18, %v1365_v11  ;;  %v1369_v15 = vmax.f32 %v1353_v45, 0.0  ;;  %v1357_v54 = vmul.f32 %v2473_v31, %v3164_v40  ;;  %v1358_v48 = vmul.f32 %v2473_v31, %v3166_v3  ;;  %2365 = vmatprep.subr.bf16.mxu1 %v2462_v1  ;;  %v2464_v40 = vld [vmem:[%s3304_s1 + $0x218] sm:$0xff]   ;;  %v2465_v3 = vld [vmem:[%s3304_s1 + $0x220] sm:$0xff]  }
 0x318   :  { %2353 = vmatprep.mubr.bf16.mxu0 %v1377_v46  ;;  %v1379_v20 = vpack.c.bf16 %v1368_v61, %v1367_v60  ;;  %v1370_v16 = vmax.f32 %v1354_v52, 0.0  ;;  %v1371_v63 = vmax.f32 %v1355_v13, 0.0  ;;  %2366 = vmatpush3.bf16.msra.mxu1 %v2462_v1 }
 0x319   :  { %v1373_v19 = vmax.f32 %v1357_v54, 0.0  ;;  %v1374_v0 = vmax.f32 %v1358_v48, 0.0  ;;  %2367 = vmatprep.subr.bf16.mxu1 %v2463_v51 }
 0x31a   :  { %v1380_v56 = vpack.c.bf16 %v1370_v16, %v1369_v15  ;;  %v1381_v50 = vpack.c.bf16 %v1372_v5, %v1371_v63 }
 0x31b   :  { %v1382_v21 = vpack.c.bf16 %v1374_v0, %v1373_v19 }
 0x31c   :  { %2368 = vmatpush3.bf16.msra.mxu1 %v2463_v51 }
 0x31d   :  { %2369 = vmatprep.subr.bf16.mxu1 %v2464_v40 }
 0x31f   :  { %2354 = vmatmul.mubr.bf16.gmra.mrb[68].mxu0 %v1378_v62 }
 0x320   :  { %2357 = vmatprep.mubr.bf16.mxu0 %v1379_v20  ;;  %2370 = vmatpush3.bf16.msra.mxu1 %v2464_v40 }
 0x321   :  { %2371 = vmatprep.subr.bf16.mxu1 %v2465_v3 }
 0x324   :  { %2372 = vmatpush3.bf16.msra.mxu1 %v2465_v3 }
 0x325   :  { %2373 = vmatprep.subr.bf16.mxu1 %v2466_v23 }
 0x327   :  { %2358 = vmatmul.mubr.bf16.gmra.mrb[72].mxu0 %v1380_v56 }
 0x328   :  { %2361 = vmatprep.mubr.bf16.mxu0 %v1381_v50  ;;  %2374 = vmatpush3.bf16.msra.mxu1 %v2466_v23 }
 0x329   :  { %2375 = vmatprep.subr.bf16.mxu1 %v2467_v26 }
 0x32c   :  { %2376 = vmatpush3.bf16.msra.mxu1 %v2467_v26 }
 0x32d   :  { %2377 = vmatprep.subr.bf16.mxu1 %v2468_v2 }
 0x32f   :  { %2362 = vmatmul.mubr.bf16.gmra.mrb[76].mxu0 %v1382_v21 }
 0x330   :  { %2378 = vmatpush3.bf16.msra.mxu1 %v2468_v2 }
 0x331   :  { %2379 = vmatprep.subr.bf16.mxu1 %v2469_v28 }
 0x334   :  { %2380 = vmatpush3.bf16.msra.mxu1 %v2469_v28 }
 0x3ea   :  { %v2351_v4 = vpop.f32.mrb[64].mxu0 }
 0x3eb   :  { %v1481_v32 = vpop.f32.mrb[65].mxu0 }
 0x3ec   :  { %v2352_v6 = vpop.f32.mrb[66].mxu0 }
 0x3ed   :  { %v1484_v25 = vpop.f32.mrb[67].mxu0 }
 0x3ee   :  { %v1544_v33 = vadd.f32 %v1484_v25, %v1481_v32 }
 0x3f0   :  { %v1545_v8 = vadd.f32 %v2351_v4, %v1544_v33 }
 0x3f2   :  { %v2355_v35 = vpop.f32.mrb[68].mxu0  ;;  %v1546_v29 = vadd.f32 %v2352_v6, %v1545_v8 }
 0x3f3   :  { %v1497_v39 = vpop.f32.mrb[69].mxu0 }
 0x3f4   :  { %v1547_v41 = vadd.f32 %v1546_v29, %v1497_v39  ;;  %v2356_v12 = vpop.f32.mrb[70].mxu0 }
 0x3f5   :  { %v1500_v14 = vpop.f32.mrb[71].mxu0 }
 0x3f6   :  { %v1548_v53 = vadd.f32 %v1547_v41, %v1500_v14 }
 0x3f8   :  { %v1549_v30 = vadd.f32 %v2355_v35, %v1548_v53 }
 0x3fa   :  { %v2359_v36 = vpop.f32.mrb[72].mxu0  ;;  %v1550_v31 = vadd.f32 %v2356_v12, %v1549_v30 }
 0x3fb   :  { %v1513_v47 = vpop.f32.mrb[73].mxu0 }
 0x3fc   :  { %v1551_v55 = vadd.f32 %v1550_v31, %v1513_v47  ;;  %v2360_v49 = vpop.f32.mrb[74].mxu0 }
 0x3fd   :  { %v1516_v57 = vpop.f32.mrb[75].mxu0 }
 0x3fe   :  { %v1552_v38 = vadd.f32 %v1551_v55, %v1516_v57 }
 0x400   :  { %v1553_v44 = vadd.f32 %v2359_v36, %v1552_v38 }
 0x402   :  { %v2363_v22 = vpop.f32.mrb[76].mxu0  ;;  %v1554_v17 = vadd.f32 %v2360_v49, %v1553_v44 }
 0x403   :  { %v1529_v5 = vpop.f32.mrb[77].mxu0 }
 0x404   :  { %v1555_v37 = vadd.f32 %v1554_v17, %v1529_v5  ;;  %v2364_v42 = vpop.f32.mrb[78].mxu0 }
 0x405   :  { %v1532_v43 = vpop.f32.mrb[79].mxu0 }
 0x406   :  { %v1556_v58 = vadd.f32 %v1555_v37, %v1532_v43 }
 0x408   :  { %v1557_v59 = vadd.f32 %v2363_v22, %v1556_v58 }
 0x40a   :  { %v1558_v7 = vadd.f32 %v2364_v42, %v1557_v59 }
 0x40c   :  { %v1559_v9 = vrot.slane %v1558_v7, 4 }
 0x40e   :  { %v1560_v10 = vadd.f32 %v1559_v9, %v1558_v7 }
 0x410   :  { %v1561_v11 = vrot.slane %v1560_v10, 2 }
 0x412   :  { %v1562_v34 = vadd.f32 %v1561_v11, %v1560_v10 }
 0x414   :  { %v1563_v24 = vrot.slane %v1562_v34, 1 }
 0x416   :  { %v1564_v27 = vadd.f32 %v1563_v24, %v1562_v34 }
 0x418   :  { %v1565_v46 = vmul.f32 0.0078125, %v1564_v27 }
 0x41a   :  { %v1566_v18 = vsub.f32 %v1481_v32, %v1565_v46  ;;  %v1567_v45 = vsub.f32 %v1484_v25, %v1565_v46  ;;  %v1568_v60 = vsub.f32 %v2351_v4, %v1565_v46  ;;  %v1569_v61 = vsub.f32 %v2352_v6, %v1565_v46 }
 0x41b   :  { %v1570_v52 = vsub.f32 %v1497_v39, %v1565_v46  ;;  %v1571_v13 = vsub.f32 %v1500_v14, %v1565_v46  ;;  %v1572_v62 = vsub.f32 %v2355_v35, %v1565_v46  ;;  %v3216_v15 = vsub.f32 %v2356_v12, %v1565_v46 }
 0x41c   :  { %v3218_v54 = vsub.f32 %v1513_v47, %v1565_v46  ;;  %v3220_v48 = vsub.f32 %v1516_v57, %v1565_v46  ;;  %v3222_v20 = vsub.f32 %v2359_v36, %v1565_v46  ;;  %v3224_v16 = vsub.f32 %v2360_v49, %v1565_v46 }
 0x41d   :  { %v3226_v63 = vsub.f32 %v1529_v5, %v1565_v46  ;;  %v1579_v19 = vsub.f32 %v1532_v43, %v1565_v46  ;;  %v3228_v0 = vsub.f32 %v2363_v22, %v1565_v46  ;;  %v3230_v56 = vsub.f32 %v2364_v42, %v1565_v46 }
 0x41e   :  { %v1582_v50 = vmul.f32 %v1566_v18, %v1566_v18  ;;  %v1583_v21 = vmul.f32 %v1567_v45, %v1567_v45  ;;  %v1584_v1 = vmul.f32 %v1568_v60, %v1568_v60  ;;  %v1585_v40 = vmul.f32 %v1569_v61, %v1569_v61 }
 0x41f   :  { %v1586_v23 = vmul.f32 %v1570_v52, %v1570_v52  ;;  %v1587_v2 = vmul.f32 %v1571_v13, %v1571_v13  ;;  %v1588_v4 = vmul.f32 %v1572_v62, %v1572_v62  ;;  %v1589_v6 = vmul.f32 %v3216_v15, %v3216_v15 }
 0x420   :  { %v1598_v51 = vadd.f32 %v1583_v21, %v1582_v50  ;;  %v1590_v33 = vmul.f32 %v3218_v54, %v3218_v54  ;;  %v1591_v35 = vmul.f32 %v3220_v48, %v3220_v48  ;;  %v1592_v39 = vmul.f32 %v3222_v20, %v3222_v20 }
 0x421   :  { %v1593_v12 = vmul.f32 %v3224_v16, %v3224_v16  ;;  %v1594_v53 = vmul.f32 %v3226_v63, %v3226_v63  ;;  %v1595_v36 = vmul.f32 %v1579_v19, %v1579_v19  ;;  %v1596_v47 = vmul.f32 %v3228_v0, %v3228_v0 }
 0x422   :  { %v1599_v3 = vadd.f32 %v1598_v51, %v1584_v1  ;;  %v1597_v49 = vmul.f32 %v3230_v56, %v3230_v56 }
 0x424   :  { %v1600_v26 = vadd.f32 %v1599_v3, %v1585_v40 }
 0x426   :  { %v1601_v28 = vadd.f32 %v1600_v26, %v1586_v23 }
 0x428   :  { %v1602_v32 = vadd.f32 %v1601_v28, %v1587_v2 }
 0x42a   :  { %v1603_v25 = vadd.f32 %v1602_v32, %v1588_v4 }
 0x42c   :  { %v1604_v8 = vadd.f32 %v1603_v25, %v1589_v6 }
 0x42e   :  { %v1605_v29 = vadd.f32 %v1604_v8, %v1590_v33 }
 0x430   :  { %v1606_v41 = vadd.f32 %v1605_v29, %v1591_v35 }
 0x432   :  { %v1607_v14 = vadd.f32 %v1606_v41, %v1592_v39 }
 0x434   :  { %v1608_v30 = vadd.f32 %v1607_v14, %v1593_v12 }
 0x436   :  { %v1609_v31 = vadd.f32 %v1608_v30, %v1594_v53 }
 0x438   :  { %v1610_v55 = vadd.f32 %v1609_v31, %v1595_v36 }
 0x43a   :  { %v1611_v57 = vadd.f32 %v1610_v55, %v1596_v47 }
 0x43c   :  { %v1612_v38 = vadd.f32 %v1611_v57, %v1597_v49 }
 0x43e   :  { %v1613_v44 = vrot.slane %v1612_v38, 4 }
 0x440   :  { %v1614_v22 = vadd.f32 %v1613_v44, %v1612_v38 }
 0x442   :  { %v1615_v17 = vrot.slane %v1614_v22, 2 }
 0x444   :  { %v1616_v5 = vadd.f32 %v1615_v17, %v1614_v22 }
 0x446   :  { %v1617_v37 = vrot.slane %v1616_v5, 1 }
 0x448   :  { %v1618_v42 = vadd.f32 %v1617_v37, %v1616_v5 }
 0x44a   :  { %v1619_v43 = vmul.f32 0.0078125, %v1618_v42 }
 0x44c   :  { %v1620_v58 = vadd.f32 1e-05, %v1619_v43 }
 0x44e   :  { %2474 = vrsqrt.f32 %v1620_v58 }
 0x458   :  { %v2475_v59 = vpop.eup %2474 }
 0x459   :  { %v1635_v7 = vmul.f32 %v2475_v59, %v1579_v19  ;;  %v1622_v9 = vmul.f32 %v2475_v59, %v1566_v18  ;;  %v1623_v10 = vmul.f32 %v2475_v59, %v1567_v45  ;;  %v1624_v11 = vmul.f32 %v2475_v59, %v1568_v60 }
 0x45a   :  { %v1625_v34 = vmul.f32 %v2475_v59, %v1569_v61  ;;  %v1626_v24 = vmul.f32 %v2475_v59, %v1570_v52  ;;  %v1627_v27 = vmul.f32 %v2475_v59, %v1571_v13  ;;  %v1628_v46 = vmul.f32 %v2475_v59, %v1572_v62 }
 0x45b   :  { %v1651_v50 = vmax.f32 %v1635_v7, 0.0  ;;  %v1638_v21 = vmax.f32 %v1622_v9, 0.0  ;;  %v1639_v1 = vmax.f32 %v1623_v10, 0.0  ;;  %v1640_v51 = vmax.f32 %v1624_v11, 0.0 }
 0x45c   :  { %v1641_v40 = vmax.f32 %v1625_v34, 0.0  ;;  %v1642_v3 = vmax.f32 %v1626_v24, 0.0  ;;  %v1643_v23 = vmax.f32 %v1627_v27, 0.0  ;;  %v1629_v26 = vmul.f32 %v2475_v59, %v3216_v15 }
 0x45d   :  { %v1654_v2 = vpack.c.bf16 %v1639_v1, %v1638_v21  ;;  %v1644_v28 = vmax.f32 %v1628_v46, 0.0  ;;  %v1630_v19 = vmul.f32 %v2475_v59, %v3218_v54  ;;  %v1631_v18 = vmul.f32 %v2475_v59, %v3220_v48 }
 0x45e   :  { %v1655_v45 = vpack.c.bf16 %v1641_v40, %v1640_v51  ;;  %v1656_v60 = vpack.c.bf16 %v1643_v23, %v1642_v3  ;;  %v1645_v61 = vmax.f32 %v1629_v26, 0.0  ;;  %v1632_v52 = vmul.f32 %v2475_v59, %v3222_v20 }
 0x45f   :  { %2381 = vmatprep.mubr.bf16.mxu1 %v1654_v2  ;;  %v1646_v13 = vmax.f32 %v1630_v19, 0.0  ;;  %v1647_v62 = vmax.f32 %v1631_v18, 0.0  ;;  %v1633_v4 = vmul.f32 %v2475_v59, %v3224_v16  ;;  %v1634_v32 = vmul.f32 %v2475_v59, %v3226_v63 }
 0x460   :  { %2382 = vmatmul.mubr.bf16.vlgmr.msra.gmra.mrb[64].mxu1 %v1655_v45  ;;  %v1657_v15 = vpack.c.bf16 %v1645_v61, %v1644_v28  ;;  %v1648_v6 = vmax.f32 %v1632_v52, 0.0  ;;  %v1636_v25 = vmul.f32 %v2475_v59, %v3228_v0  ;;  %v1637_v54 = vmul.f32 %v2475_v59, %v3230_v56 }
 0x461   :  { %2385 = vmatprep.mubr.bf16.mxu1 %v1656_v60  ;;  %v1658_v48 = vpack.c.bf16 %v1647_v62, %v1646_v13  ;;  %v1649_v33 = vmax.f32 %v1633_v4, 0.0  ;;  %v1650_v8 = vmax.f32 %v1634_v32, 0.0 }
 0x462   :  { %v1652_v35 = vmax.f32 %v1636_v25, 0.0  ;;  %v1653_v20 = vmax.f32 %v1637_v54, 0.0 }
 0x463   :  { %v1659_v29 = vpack.c.bf16 %v1649_v33, %v1648_v6  ;;  %v1660_v39 = vpack.c.bf16 %v1651_v50, %v1650_v8 }
 0x464   :  { %v1661_v41 = vpack.c.bf16 %v1653_v20, %v1652_v35 }
 0x468   :  { %2386 = vmatmul.mubr.bf16.gmra.mrb[68].mxu1 %v1657_v15 }
 0x469   :  { %2389 = vmatprep.mubr.bf16.mxu1 %v1658_v48 }
 0x470   :  { %2390 = vmatmul.mubr.bf16.gmra.mrb[72].mxu1 %v1659_v29 }
 0x471   :  { %2393 = vmatprep.mubr.bf16.mxu1 %v1660_v39 }
 0x478   :  { %2394 = vmatmul.mubr.bf16.gmra.mrb[76].mxu1 %v1661_v41 }
 0x533   :  { %v2383_v16 = vpop.f32.mrb[64].mxu1 }
 0x534   :  { %v1760_v63 = vpop.f32.mrb[65].mxu1 }
 0x535   :  { %v2384_v12 = vpop.f32.mrb[66].mxu1 }
 0x536   :  { %v1763_v0 = vpop.f32.mrb[67].mxu1 }
 0x537   :  { %v1823_v14 = vadd.f32 %v1763_v0, %v1760_v63 }
 0x539   :  { %v1824_v56 = vadd.f32 %v2383_v16, %v1823_v14 }
 0x53b   :  { %v2387_v53 = vpop.f32.mrb[68].mxu1  ;;  %v1825_v30 = vadd.f32 %v2384_v12, %v1824_v56 }
 0x53c   :  { %v1776_v36 = vpop.f32.mrb[69].mxu1 }
 0x53d   :  { %v1826_v31 = vadd.f32 %v1825_v30, %v1776_v36  ;;  %v2388_v47 = vpop.f32.mrb[70].mxu1 }
 0x53e   :  { %v1779_v55 = vpop.f32.mrb[71].mxu1 }
 0x53f   :  { %v1827_v49 = vadd.f32 %v1826_v31, %v1779_v55 }
 0x541   :  { %v1828_v57 = vadd.f32 %v2387_v53, %v1827_v49 }
 0x543   :  { %v2391_v38 = vpop.f32.mrb[72].mxu1  ;;  %v1829_v44 = vadd.f32 %v2388_v47, %v1828_v57 }
 0x544   :  { %v1792_v22 = vpop.f32.mrb[73].mxu1 }
 0x545   :  { %v1830_v17 = vadd.f32 %v1829_v44, %v1792_v22  ;;  %v2392_v5 = vpop.f32.mrb[74].mxu1 }
 0x546   :  { %v1795_v37 = vpop.f32.mrb[75].mxu1 }
 0x547   :  { %v1831_v42 = vadd.f32 %v1830_v17, %v1795_v37 }
 0x549   :  { %v1832_v43 = vadd.f32 %v2391_v38, %v1831_v42 }
 0x54b   :  { %v2395_v58 = vpop.f32.mrb[76].mxu1  ;;  %v1833_v59 = vadd.f32 %v2392_v5, %v1832_v43 }
 0x54c   :  { %v1808_v7 = vpop.f32.mrb[77].mxu1 }
 0x54d   :  { %v1834_v9 = vadd.f32 %v1833_v59, %v1808_v7  ;;  %v2396_v10 = vpop.f32.mrb[78].mxu1 }
 0x54e   :  { %v1811_v11 = vpop.f32.mrb[79].mxu1 }
 0x54f   :  { %v1835_v34 = vadd.f32 %v1834_v9, %v1811_v11 }
 0x551   :  { %v1836_v24 = vadd.f32 %v2395_v58, %v1835_v34 }
 0x553   :  { %v1837_v27 = vadd.f32 %v2396_v10, %v1836_v24 }
 0x555   :  { %v1838_v46 = vrot.slane %v1837_v27, 4 }
 0x557   :  { %v1839_v50 = vadd.f32 %v1838_v46, %v1837_v27 }
 0x559   :  { %v1840_v21 = vrot.slane %v1839_v50, 2 }
 0x55b   :  { %v1841_v1 = vadd.f32 %v1840_v21, %v1839_v50 }
 0x55d   :  { %v1842_v51 = vrot.slane %v1841_v1, 1 }
 0x55f   :  { %v1843_v40 = vadd.f32 %v1842_v51, %v1841_v1 }
 0x561   :  { %v1844_v3 = vmul.f32 0.0078125, %v1843_v40 }
 0x563   :  { %v1845_v23 = vsub.f32 %v1760_v63, %v1844_v3  ;;  %v1846_v26 = vsub.f32 %v1763_v0, %v1844_v3  ;;  %v1847_v2 = vsub.f32 %v2383_v16, %v1844_v3  ;;  %v1848_v28 = vsub.f32 %v2384_v12, %v1844_v3 }
 0x564   :  { %v1849_v19 = vsub.f32 %v1776_v36, %v1844_v3  ;;  %v1850_v18 = vsub.f32 %v1779_v55, %v1844_v3  ;;  %v1851_v45 = vsub.f32 %v2387_v53, %v1844_v3  ;;  %v1852_v60 = vsub.f32 %v2388_v47, %v1844_v3 }
 0x565   :  { %v1853_v61 = vsub.f32 %v1792_v22, %v1844_v3  ;;  %v1854_v52 = vsub.f32 %v1795_v37, %v1844_v3  ;;  %v1855_v13 = vsub.f32 %v2391_v38, %v1844_v3  ;;  %v1856_v62 = vsub.f32 %v2392_v5, %v1844_v3 }
 0x566   :  { %v1857_v4 = vsub.f32 %v1808_v7, %v1844_v3  ;;  %v1858_v32 = vsub.f32 %v1811_v11, %v1844_v3  ;;  %v1859_v15 = vsub.f32 %v2395_v58, %v1844_v3  ;;  %v1860_v6 = vsub.f32 %v2396_v10, %v1844_v3 }
 0x567   :  { %v1861_v25 = vmul.f32 %v1845_v23, %v1845_v23  ;;  %v1862_v54 = vmul.f32 %v1846_v26, %v1846_v26  ;;  %v1863_v48 = vmul.f32 %v1847_v2, %v1847_v2  ;;  %v1864_v8 = vmul.f32 %v1848_v28, %v1848_v28 }
 0x568   :  { %v1865_v20 = vmul.f32 %v1849_v19, %v1849_v19  ;;  %v1866_v39 = vmul.f32 %v1850_v18, %v1850_v18  ;;  %v1867_v16 = vmul.f32 %v1851_v45, %v1851_v45  ;;  %v1868_v12 = vmul.f32 %v1852_v60, %v1852_v60 }
 0x569   :  { %v1877_v33 = vadd.f32 %v1862_v54, %v1861_v25  ;;  %v1869_v14 = vmul.f32 %v1853_v61, %v1853_v61  ;;  %v1870_v53 = vmul.f32 %v1854_v52, %v1854_v52  ;;  %v1871_v36 = vmul.f32 %v1855_v13, %v1855_v13 }
 0x56a   :  { %v1872_v47 = vmul.f32 %v1856_v62, %v1856_v62  ;;  %v1873_v49 = vmul.f32 %v1857_v4, %v1857_v4  ;;  %v1874_v38 = vmul.f32 %v1858_v32, %v1858_v32  ;;  %v1875_v22 = vmul.f32 %v1859_v15, %v1859_v15 }
 0x56b   :  { %v1878_v35 = vadd.f32 %v1877_v33, %v1863_v48  ;;  %v1876_v5 = vmul.f32 %v1860_v6, %v1860_v6 }
 0x56d   :  { %v1879_v29 = vadd.f32 %v1878_v35, %v1864_v8 }
 0x56f   :  { %v1880_v41 = vadd.f32 %v1879_v29, %v1865_v20 }
 0x571   :  { %v1881_v63 = vadd.f32 %v1880_v41, %v1866_v39 }
 0x573   :  { %v1882_v0 = vadd.f32 %v1881_v63, %v1867_v16 }
 0x575   :  { %v1883_v56 = vadd.f32 %v1882_v0, %v1868_v12 }
 0x577   :  { %v1884_v30 = vadd.f32 %v1883_v56, %v1869_v14 }
 0x579   :  { %v1885_v31 = vadd.f32 %v1884_v30, %v1870_v53 }
 0x57b   :  { %v1886_v55 = vadd.f32 %v1885_v31, %v1871_v36 }
 0x57d   :  { %v1887_v57 = vadd.f32 %v1886_v55, %v1872_v47 }
 0x57f   :  { %v1888_v44 = vadd.f32 %v1887_v57, %v1873_v49 }
 0x581   :  { %v1889_v17 = vadd.f32 %v1888_v44, %v1874_v38 }
 0x583   :  { %v1890_v37 = vadd.f32 %v1889_v17, %v1875_v22 }
 0x585   :  { %v1891_v42 = vadd.f32 %v1890_v37, %v1876_v5 }
 0x587   :  { %v1892_v43 = vrot.slane %v1891_v42, 4 }
 0x589   :  { %v1893_v58 = vadd.f32 %v1892_v43, %v1891_v42 }
 0x58b   :  { %v1894_v59 = vrot.slane %v1893_v58, 2 }
 0x58d   :  { %v1895_v7 = vadd.f32 %v1894_v59, %v1893_v58 }
 0x58f   :  { %v1896_v9 = vrot.slane %v1895_v7, 1 }
 0x591   :  { %v1897_v10 = vadd.f32 %v1896_v9, %v1895_v7 }
 0x593   :  { %v1898_v11 = vmul.f32 0.0078125, %v1897_v10 }
 0x595   :  { %v1899_v34 = vadd.f32 1e-05, %v1898_v11 }
 0x597   :  { %2476 = vrsqrt.f32 %v1899_v34 }
 0x5a1   :  { %v2477_v24 = vpop.eup %2476 }
 0x5a2   :  { %v1901_v27 = vmul.f32 %v2477_v24, %v1845_v23  ;;  %v1902_v46 = vmul.f32 %v2477_v24, %v1846_v26  ;;  %v1903_v50 = vmul.f32 %v2477_v24, %v1847_v2  ;;  %v1904_v21 = vmul.f32 %v2477_v24, %v1848_v28 }
 0x5a3   :  { %v1905_v1 = vmul.f32 %v2477_v24, %v1849_v19  ;;  %v1906_v51 = vmul.f32 %v2477_v24, %v1850_v18  ;;  %v1907_v40 = vmul.f32 %v2477_v24, %v1851_v45  ;;  %v1908_v3 = vmul.f32 %v2477_v24, %v1852_v60 }
 0x5a4   :  { %v1909_v25 = vmul.f32 %v2477_v24, %v1853_v61  ;;  %v1910_v54 = vmul.f32 %v2477_v24, %v1854_v52  ;;  %v1911_v48 = vmul.f32 %v2477_v24, %v1855_v13  ;;  %v1912_v33 = vmul.f32 %v2477_v24, %v1856_v62 }
 0x5a5   :  { %v1913_v8 = vmul.f32 %v2477_v24, %v1857_v4  ;;  %v1914_v35 = vmul.f32 %v2477_v24, %v1858_v32  ;;  %v1915_v20 = vmul.f32 %v2477_v24, %v1859_v15  ;;  %v1916_v29 = vmul.f32 %v2477_v24, %v1860_v6 }
 0x5a6   :  { %v1917_v39 = vmax.f32 %v1901_v27, 0.0  ;;  %v1918_v41 = vmax.f32 %v1902_v46, 0.0  ;;  %v1919_v16 = vmax.f32 %v1903_v50, 0.0  ;;  %v1920_v63 = vmax.f32 %v1904_v21, 0.0 }
 0x5a7   :  { %v1921_v23 = vmax.f32 %v1905_v1, 0.0  ;;  %v1922_v26 = vmax.f32 %v1906_v51, 0.0  ;;  %v1923_v2 = vmax.f32 %v1907_v40, 0.0  ;;  %v1924_v28 = vmax.f32 %v1908_v3, 0.0 }
 0x5a8   :  { %v1925_v19 = vmax.f32 %v1909_v25, 0.0  ;;  %v1926_v18 = vmax.f32 %v1910_v54, 0.0  ;;  %v1927_v45 = vmax.f32 %v1911_v48, 0.0  ;;  %v1928_v60 = vmax.f32 %v1912_v33, 0.0  ;;  %1933 = vst [vmem:[%s3306_s2] sm:$0xff] %v1917_v39  ;;  %1934 = vst [vmem:[%s3306_s2 + $0x8] sm:$0xff] %v1918_v41 }
 0x5a9   :  { %1935 = vst [vmem:[%s3306_s2 + $0x10] sm:$0xff] %v1919_v16  ;;  %1936 = vst [vmem:[%s3306_s2 + $0x18] sm:$0xff] %v1920_v63  ;;  %v1929_v61 = vmax.f32 %v1913_v8, 0.0  ;;  %v1930_v52 = vmax.f32 %v1914_v35, 0.0  ;;  %v1931_v13 = vmax.f32 %v1915_v20, 0.0  ;;  %v1932_v62 = vmax.f32 %v1916_v29, 0.0 }
 0x5aa   :  { %1937 = vst [vmem:[%s3306_s2 + $0x20] sm:$0xff] %v1921_v23  ;;  %1938 = vst [vmem:[%s3306_s2 + $0x28] sm:$0xff] %v1922_v26 }
 0x5ab   :  { %1939 = vst [vmem:[%s3306_s2 + $0x30] sm:$0xff] %v1923_v2  ;;  %1940 = vst [vmem:[%s3306_s2 + $0x38] sm:$0xff] %v1924_v28 }
 0x5ac   :  { %1941 = vst [vmem:[%s3306_s2 + $0x40] sm:$0xff] %v1925_v19  ;;  %1942 = vst [vmem:[%s3306_s2 + $0x48] sm:$0xff] %v1926_v18 }
 0x5ad   :  { %1943 = vst [vmem:[%s3306_s2 + $0x50] sm:$0xff] %v1927_v45  ;;  %1944 = vst [vmem:[%s3306_s2 + $0x58] sm:$0xff] %v1928_v60 }
 0x5ae   :  { %1945 = vst [vmem:[%s3306_s2 + $0x60] sm:$0xff] %v1929_v61  ;;  %1946 = vst [vmem:[%s3306_s2 + $0x68] sm:$0xff] %v1930_v52 }
 0x5af   :  { %1947 = vst [vmem:[%s3306_s2 + $0x70] sm:$0xff] %v1931_v13  ;;  %1948 = vst [vmem:[%s3306_s2 + $0x78] sm:$0xff] %v1932_v62 }

</bundles_post_ra>
